<compile_context>
chip_gen: v7x
topology: tpu7x:2x2x1
jax: 0.10.0
libtpu: 0.0.40
codegen_flags: <defaults>
</compile_context>

<pallas_src>
import functools

import numpy as np
import jax
import jax.numpy as jnp
from jax.experimental import pallas as pl
from jax.experimental.pallas import tpu as pltpu


def _round_up(a, b):
    return (a + b - 1) // b * b


# ------------------------------ fused DCM kernel ------------------------------ #

def _make_dcm_kernel(H, W, Cin, mid_pad, out_C, dilations, block_n, mxu_dtype):
    """Builds the fused DCM kernel (block_n samples per grid step)."""
    npix = H * W
    d_max = max(dilations)
    halo = d_max * (W + 1)                 # max |flat tap offset| from the interior
    base = _round_up(halo, 128)            # lane-aligned interior store
    pad_len = base + npix + halo
    Kbig = len(dilations) * 9 * mid_pad

    def kernel(x_ref, g_ref, ws_ref, bs_ref, wflat_ref, col_ref,
               o_ref, xpad_ref, taps_ref):
        # x_ref:     (block_n, Cin, npix)   NCHW samples, spatial flattened (lanes)
        # g_ref:     (block_n, 1, Kbig)     per-sample gains kern[c, t] laid out K-major
        # ws/bs:     ((mid_pad+out_C), Cin) / (.., 1)   stacked [trans_ ; fuse_out|x]
        # wflat:     (out_C, Kbig)          wm[d] tiled over the 9 taps, channel-minor
        # col:       (1, npix) int32        pixel column index (p % W)
        # o_ref:     (block_n, out_C, npix)
        # xpad_ref:  (mid_pad, pad_len) f32 shared zero-padded buffer
        # taps_ref:  (Kbig, npix)           stacked masked taps (MXU RHS)

        # --- zero ONLY the halo strips; interior is overwritten per sample.
        #     (re-done every step: each TensorCore has its own scratch under the
        #      "parallel" batch axis, so no program_id gating.)
        xpad_ref[:, 0:base] = jnp.zeros((mid_pad, base), jnp.float32)
        xpad_ref[:, base + npix:pad_len] = jnp.zeros(
            (mid_pad, pad_len - base - npix), jnp.float32)

        # --- W-boundary validity masks, one per distinct column shift, hoisted.
        col = col_ref[...]                                       # (1, npix) int32
        masks = {}
        for d in dilations:
            for shift in (-d, d):
                if shift not in masks:
                    valid = (col + shift >= 0) & (col + shift < W)
                    masks[shift] = jnp.broadcast_to(
                        valid.astype(jnp.float32), (mid_pad, npix))

        for n in range(block_n):
            xb = x_ref[n]                                        # (Cin, npix)

            # stacked 1x1 convs: rows [0:mid_pad) = trans_, rows [mid_pad:) = fuse|x
            z = jnp.dot(ws_ref[...], xb,
                        preferred_element_type=jnp.float32) + bs_ref[...]
            x_inside = z[:mid_pad, :]                            # (mid_pad, npix)
            acc = z[mid_pad:, :]                                 # (out_C,  npix)

            # interior store (lane-aligned: base % 128 == 0)
            xpad_ref[:, base:base + npix] = x_inside

            # per-sample 3x3 gains folded into the fuse weights (tiny elementwise op)
            w_big = (wflat_ref[...] * g_ref[n]).astype(mxu_dtype)   # (out_C, Kbig)

            # stack the 27 masked taps: rows [(d*9 + i*3 + j)*mid_pad : +mid_pad)
            for di, d in enumerate(dilations):
                for i in range(3):
                    for j in range(3):
                        s = base + (i - 1) * d * W + (j - 1) * d     # static offset
                        tap = xpad_ref[:, s:s + npix]                # (mid_pad, npix)
                        if j != 1:                                   # mask W-row wrap
                            tap = tap * masks[(j - 1) * d]
                        k0 = (di * 9 + i * 3 + j) * mid_pad
                        taps_ref[k0:k0 + mid_pad, :] = tap.astype(mxu_dtype)

            # ONE MXU matmul = depthwise accumulate + fuse_inside + fuse_outside
            acc = acc + jnp.dot(w_big, taps_ref[...],
                                preferred_element_type=jnp.float32)
            o_ref[n] = acc.astype(o_ref.dtype)

    return kernel, base, pad_len, Kbig


# ------------------------- host-side constant helpers ------------------------- #

def _pool_matrix(size):
    """(3, size) averaging matrix implementing PyTorch AdaptiveAvgPool bins."""
    m = np.zeros((3, size), np.float32)
    for i in range(3):
        s = (i * size) // 3
        e = -((-(i + 1) * size) // 3)          # ceil((i+1)*size/3)
        m[i, s:e] = 1.0 / (e - s)
    return m


# ----------------------------------- wrapper ----------------------------------- #

def dcm_forward(params, x, y, dilations, *, block_n=1, mxu_dtype=jnp.float32):
    """x, y in NCHW (PyTorch convention); returns NCHW."""
    N, Cin, H, W = x.shape
    mid_C = Cin // 4
    mid_pad = max(8, _round_up(mid_C, 8))      # sublane-aligned channel block
    out_C = params['w_fo'].shape[0]
    num = len(dilations)
    npix = H * W
    Hy, Wy = y.shape[2], y.shape[3]

    block_n = max(1, min(block_n, N))
    while N % block_n:
        block_n -= 1

    # ---------- trace-time folding (tiny linear algebra, runs in XLA) ----------
    # AdaptiveAvgPool2d(3) as two constant averaging matmuls
    Ph = jnp.asarray(_pool_matrix(Hy))
    Pw = jnp.asarray(_pool_matrix(Wy))
    pooled = jnp.einsum('ph,nchw,qw->ncpq', Ph, y, Pw).reshape(N, Cin, 9)

    # per-sample 3x3 gains kern[n, c, t] (ger_kernel 1x1 conv), flattened to the
    # gain row g[n, (d*9 + t)*mid_pad + c] that scales the folded fuse weights
    kern = (jnp.einsum('mc,nct->nmt', params['w_ger'], pooled)
            + params['b_ger'][None, :, None])                       # (N, mid_C, 9)
    kern = jnp.pad(kern, ((0, 0), (0, mid_pad - mid_C), (0, 0)))    # (N, mid_pad, 9)
    Kbig = num * 9 * mid_pad
    g = jnp.transpose(kern, (0, 2, 1)).reshape(N, 9 * mid_pad)      # [n, t*mid_pad + c]
    g = jnp.tile(g, (1, num)).reshape(N, 1, Kbig)                   # same per dilation

    # fold fuse_inside into fuse_outside:
    #   out = Wfo_x @ x + sum_d (Wfo_d @ Wfi) @ dw_d + (b_fo + sum_d Wfo_d @ b_fi)
    w_fo, w_fi = params['w_fo'], params['w_fi']
    b_fo, b_fi = params['b_fo'], params['b_fi']
    wfo_x = w_fo[:, :Cin]                                               # (out_C, Cin)
    wfo_blk = w_fo[:, Cin:].reshape(out_C, num, mid_C).transpose(1, 0, 2)
    wm = jnp.einsum('dom,mk->dok', wfo_blk, w_fi)                       # (num, out_C, mid_C)
    bm = b_fo + jnp.einsum('dom,m->o', wfo_blk, b_fi)                   # (out_C,)

    # dilation-major / tap-major / channel-minor flattening of wm (matches taps scratch)
    wm_pad = jnp.pad(wm, ((0, 0), (0, 0), (0, mid_pad - mid_C)))
    w_flat = jnp.broadcast_to(wm_pad[:, :, None, :], (num, out_C, 9, mid_pad))
    w_flat = jnp.transpose(w_flat, (1, 0, 2, 3)).reshape(out_C, Kbig).astype(mxu_dtype)

    # stacked x-branch 1x1 convs: [trans_ ; fuse_outside|x], sublane-aligned split
    rows = mid_pad + out_C
    w_stack = jnp.zeros((rows, Cin), jnp.float32)
    w_stack = w_stack.at[:mid_C].set(params['w_trans']).at[mid_pad:].set(wfo_x)
    w_stack = w_stack.astype(mxu_dtype)
    b_stack = jnp.zeros((rows, 1), jnp.float32)
    b_stack = b_stack.at[:mid_C, 0].set(params['b_trans']).at[mid_pad:, 0].set(bm)

    col = jnp.asarray((np.arange(npix, dtype=np.int32) % W).reshape(1, npix))

    x_flat = x.reshape(N, Cin, npix).astype(mxu_dtype)               # free reshape of NCHW

    kernel, base, pad_len, Kbig_k = _make_dcm_kernel(
        H, W, Cin, mid_pad, out_C, tuple(dilations), block_n, mxu_dtype)
    assert Kbig_k == Kbig

    # per-step VMEM budget -> explicit scoped limit (matters on v5e's 16 MiB default)
    mxu_bytes = jnp.dtype(mxu_dtype).itemsize
    est = (2 * block_n * Cin * npix * mxu_bytes            # x blocks (double-buffered)
           + 2 * block_n * out_C * npix * x.dtype.itemsize # out blocks
           + 2 * block_n * Kbig * 4                        # gains
           + mid_pad * pad_len * 4                         # padded scratch
           + Kbig * npix * mxu_bytes                       # stacked-tap scratch
           + 2 * num * mid_pad * npix * 4                  # hoisted masks
           + rows * (Cin + 1) * 4 + out_C * Kbig * mxu_bytes + npix * 4)
    vmem_limit = int(min(48 * 1024 * 1024, max(16 * 1024 * 1024, 2 * est)))

    out = pl.pallas_call(
        kernel,
        out_shape=jax.ShapeDtypeStruct((N, out_C, npix), x.dtype),
        grid_spec=pltpu.PrefetchScalarGridSpec(
            num_scalar_prefetch=0,
            grid=(N // block_n,),
            in_specs=[
                pl.BlockSpec((block_n, Cin, npix), lambda b: (b, 0, 0)),   # x
                pl.BlockSpec((block_n, 1, Kbig), lambda b: (b, 0, 0)),     # gains g
                pl.BlockSpec((rows, Cin), lambda b: (0, 0)),               # stacked W
                pl.BlockSpec((rows, 1), lambda b: (0, 0)),                 # stacked b
                pl.BlockSpec((out_C, Kbig), lambda b: (0, 0)),             # folded fuse W
                pl.BlockSpec((1, npix), lambda b: (0, 0)),                 # column index
            ],
            out_specs=pl.BlockSpec((block_n, out_C, npix), lambda b: (b, 0, 0)),
            scratch_shapes=[pltpu.VMEM((mid_pad, pad_len), jnp.float32),   # padded buf
                            pltpu.VMEM((Kbig, npix), mxu_dtype)],          # stacked taps
        ),
        compiler_params=pltpu.CompilerParams(
            dimension_semantics=("parallel",),          # batch blocks across TCs
            vmem_limit_bytes=vmem_limit),
    )(x_flat, g, w_stack, b_stack, w_flat, col)

    return out.reshape(N, out_C, H, W)                                   # NCHW, no transpose


# --------------------------- params / pure-JAX reference --------------------------- #

def init_dcm_params(key, in_C, out_C, num_dil):
    mid_C = in_C // 4
    ks = jax.random.split(key, 8)

    def w(k, shape, fan_in):
        return jax.random.normal(k, shape, jnp.float32) / jnp.sqrt(jnp.float32(fan_in))

    fuse_in = num_dil * mid_C + in_C
    return dict(
        w_ger=w(ks[0], (mid_C, in_C), in_C),      b_ger=w(ks[1], (mid_C,), in_C),
        w_trans=w(ks[2], (mid_C, in_C), in_C),    b_trans=w(ks[3], (mid_C,), in_C),
        w_fi=w(ks[4], (mid_C, mid_C), mid_C),     b_fi=w(ks[5], (mid_C,), mid_C),
        w_fo=w(ks[6], (out_C, fuse_in), fuse_in), b_fo=w(ks[7], (out_C,), fuse_in),
    )


def dcm_reference(params, x, y, dilations):
    """Faithful (un-folded) JAX translation of the PyTorch DCM forward."""
    N, Cin, H, W = x.shape
    Hy, Wy = y.shape[2], y.shape[3]
    Ph = jnp.asarray(_pool_matrix(Hy))
    Pw = jnp.asarray(_pool_matrix(Wy))
    pooled = jnp.einsum('ph,nchw,qw->ncpq', Ph, y, Pw)                  # (N, Cin, 3, 3)
    kern = (jnp.einsum('mc,ncpq->nmpq', params['w_ger'], pooled)
            + params['b_ger'][None, :, None, None])                    # (N, mid_C, 3, 3)
    x_inside = (jnp.einsum('mc,nchw->nmhw', params['w_trans'], x)
                + params['b_trans'][None, :, None, None])
    feats = [x]
    for d in dilations:
        xp = jnp.pad(x_inside, ((0, 0), (0, 0), (d, d), (d, d)))
        dw = jnp.zeros_like(x_inside)
        for i in range(3):
            for j in range(3):
                dw = dw + (xp[:, :, i * d:i * d + H, j * d:j * d + W]
                           * kern[:, :, i, j][:, :, None, None])
        fi = (jnp.einsum('km,nmhw->nkhw', params['w_fi'], dw)
              + params['b_fi'][None, :, None, None])
        feats.append(fi)
    cat = jnp.concatenate(feats, axis=1)
    return (jnp.einsum('oc,nchw->nohw', params['w_fo'], cat)
            + params['b_fo'][None, :, None, None])


if __name__ == "__main__":
    key = jax.random.PRNGKey(0)
    in_C, out_C = 16, 8
    dilations = (1, 2, 3)
    N, H, W = 4, 16, 16
    Hy = Wy = 12

    kx, ky, kp = jax.random.split(key, 3)
    x = jax.random.normal(kx, (N, in_C, H, W), jnp.float32)
    y = jax.random.normal(ky, (N, in_C, Hy, Wy), jnp.float32)
    params = init_dcm_params(kp, in_C, out_C, len(dilations))

    # default f32 MXU operands (keeps the check tight); pass mxu_dtype=jnp.bfloat16
    # for the v6e/v7x fast path.
    fwd = jax.jit(functools.partial(dcm_forward, dilations=dilations, block_n=2))
    out = fwd(params, x, y)
    jax.block_until_ready(out)
    assert out.shape == (N, out_C, H, W), out.shape

    ref = dcm_reference(params, x, y, dilations)
    err = float(jnp.max(jnp.abs(out - ref)))
    assert jnp.allclose(out, ref, rtol=2e-2, atol=2e-2), err

    print("KERNEL_OK")
</pallas_src>

<mosaic_0001>
module attributes {stable_mosaic.version = 11 : i64} {
  func.func @kernel(%arg0: i32, %arg1: memref<2x16x256xf32, #tpu.memory_space<vmem>>, %arg2: memref<2x1x216xf32, #tpu.memory_space<vmem>>, %arg3: memref<16x16xf32, #tpu.memory_space<vmem>>, %arg4: memref<16x1xf32, #tpu.memory_space<vmem>>, %arg5: memref<8x216xf32, #tpu.memory_space<vmem>>, %arg6: memref<1x256xi32, #tpu.memory_space<vmem>>, %arg7: memref<2x8x256xf32, #tpu.memory_space<vmem>>, %arg8: memref<8x435xf32, #tpu.memory_space<vmem>>, %arg9: memref<216x256xf32, #tpu.memory_space<vmem>>) attributes {dimension_semantics = [#tpu.dimension_semantics<parallel>], iteration_bounds = array<i64: 2>, scalar_prefetch = 0 : i64, scratch_operands = 2 : i64, tpu.core_type = #tpu.core_type<tc>, window_params = [{transform_indices = @transform_0, window_bounds = array<i64: 2, 16, 256>}, {transform_indices = @transform_1, window_bounds = array<i64: 2, 1, 216>}, {pipeline_mode = #tpu.pipeline_mode<synchronous>, transform_indices = @transform_2, window_bounds = array<i64: 16, 16>}, {pipeline_mode = #tpu.pipeline_mode<synchronous>, transform_indices = @transform_3, window_bounds = array<i64: 16, 1>}, {pipeline_mode = #tpu.pipeline_mode<synchronous>, transform_indices = @transform_4, window_bounds = array<i64: 8, 216>}, {pipeline_mode = #tpu.pipeline_mode<synchronous>, transform_indices = @transform_5, window_bounds = array<i64: 1, 256>}, {transform_indices = @transform_6, window_bounds = array<i64: 2, 8, 256>}]} {
    %cst = arith.constant 0.000000e+00 : f32
    %0 = vector.broadcast %cst : f32 to vector<8x128xf32>
    %c0 = arith.constant 0 : index
    %c0_0 = arith.constant 0 : index
    %1 = vector.load %arg8[%c0, %c0_0] : memref<8x435xf32, #tpu.memory_space<vmem>>, vector<8x128xf32>
    tpu.vector_store %arg8[%c0, %c0_0], %0 {strides = array<i32>} : memref<8x435xf32, #tpu.memory_space<vmem>>, vector<8x128xf32>,
    %cst_1 = arith.constant 0.000000e+00 : f32
    %2 = vector.broadcast %cst_1 : f32 to vector<8x51xf32>
    %c0_2 = arith.constant 0 : index
    %c384 = arith.constant 384 : index
    %3 = vector.load %arg8[%c0_2, %c384] : memref<8x435xf32, #tpu.memory_space<vmem>>, vector<8x51xf32>
    tpu.vector_store %arg8[%c0_2, %c384], %2 {strides = array<i32>} : memref<8x435xf32, #tpu.memory_space<vmem>>, vector<8x51xf32>,
    %c0_3 = arith.constant 0 : index
    %c0_4 = arith.constant 0 : index
    %4 = vector.load %arg6[%c0_3, %c0_4] : memref<1x256xi32, #tpu.memory_space<vmem>>, vector<1x256xi32>
    %c-1_i32 = arith.constant -1 : i32
    %5 = vector.broadcast %c-1_i32 : i32 to vector<1x256xi32>
    %6 = arith.addi %4, %5 : vector<1x256xi32>
    %c0_i32 = arith.constant 0 : i32
    %7 = vector.broadcast %c0_i32 : i32 to vector<1x256xi32>
    %8 = arith.cmpi sge, %6, %7 : vector<1x256xi32>
    %c-1_i32_5 = arith.constant -1 : i32
    %9 = vector.broadcast %c-1_i32_5 : i32 to vector<1x256xi32>
    %10 = arith.addi %4, %9 : vector<1x256xi32>
    %c16_i32 = arith.constant 16 : i32
    %11 = vector.broadcast %c16_i32 : i32 to vector<1x256xi32>
    %12 = arith.cmpi slt, %10, %11 : vector<1x256xi32>
    %13 = arith.andi %8, %12 : vector<1x256xi1>
    %14 = arith.extui %13 : vector<1x256xi1> to vector<1x256xi32>
    %15 = arith.sitofp %14 : vector<1x256xi32> to vector<1x256xf32>
    %16 = vector.shape_cast %15 : vector<1x256xf32> to vector<1x256xf32>
    %17 = vector.broadcast %16 : vector<1x256xf32> to vector<8x256xf32>
    %c1_i32 = arith.constant 1 : i32
    %18 = vector.broadcast %c1_i32 : i32 to vector<1x256xi32>
    %19 = arith.addi %4, %18 : vector<1x256xi32>
    %c0_i32_6 = arith.constant 0 : i32
    %20 = vector.broadcast %c0_i32_6 : i32 to vector<1x256xi32>
    %21 = arith.cmpi sge, %19, %20 : vector<1x256xi32>
    %c1_i32_7 = arith.constant 1 : i32
    %22 = vector.broadcast %c1_i32_7 : i32 to vector<1x256xi32>
    %23 = arith.addi %4, %22 : vector<1x256xi32>
    %c16_i32_8 = arith.constant 16 : i32
    %24 = vector.broadcast %c16_i32_8 : i32 to vector<1x256xi32>
    %25 = arith.cmpi slt, %23, %24 : vector<1x256xi32>
    %26 = arith.andi %21, %25 : vector<1x256xi1>
    %27 = arith.extui %26 : vector<1x256xi1> to vector<1x256xi32>
    %28 = arith.sitofp %27 : vector<1x256xi32> to vector<1x256xf32>
    %29 = vector.shape_cast %28 : vector<1x256xf32> to vector<1x256xf32>
    %30 = vector.broadcast %29 : vector<1x256xf32> to vector<8x256xf32>
    %c-2_i32 = arith.constant -2 : i32
    %31 = vector.broadcast %c-2_i32 : i32 to vector<1x256xi32>
    %32 = arith.addi %4, %31 : vector<1x256xi32>
    %c0_i32_9 = arith.constant 0 : i32
    %33 = vector.broadcast %c0_i32_9 : i32 to vector<1x256xi32>
    %34 = arith.cmpi sge, %32, %33 : vector<1x256xi32>
    %c-2_i32_10 = arith.constant -2 : i32
    %35 = vector.broadcast %c-2_i32_10 : i32 to vector<1x256xi32>
    %36 = arith.addi %4, %35 : vector<1x256xi32>
    %c16_i32_11 = arith.constant 16 : i32
    %37 = vector.broadcast %c16_i32_11 : i32 to vector<1x256xi32>
    %38 = arith.cmpi slt, %36, %37 : vector<1x256xi32>
    %39 = arith.andi %34, %38 : vector<1x256xi1>
    %40 = arith.extui %39 : vector<1x256xi1> to vector<1x256xi32>
    %41 = arith.sitofp %40 : vector<1x256xi32> to vector<1x256xf32>
    %42 = vector.shape_cast %41 : vector<1x256xf32> to vector<1x256xf32>
    %43 = vector.broadcast %42 : vector<1x256xf32> to vector<8x256xf32>
    %c2_i32 = arith.constant 2 : i32
    %44 = vector.broadcast %c2_i32 : i32 to vector<1x256xi32>
    %45 = arith.addi %4, %44 : vector<1x256xi32>
    %c0_i32_12 = arith.constant 0 : i32
    %46 = vector.broadcast %c0_i32_12 : i32 to vector<1x256xi32>
    %47 = arith.cmpi sge, %45, %46 : vector<1x256xi32>
    %c2_i32_13 = arith.constant 2 : i32
    %48 = vector.broadcast %c2_i32_13 : i32 to vector<1x256xi32>
    %49 = arith.addi %4, %48 : vector<1x256xi32>
    %c16_i32_14 = arith.constant 16 : i32
    %50 = vector.broadcast %c16_i32_14 : i32 to vector<1x256xi32>
    %51 = arith.cmpi slt, %49, %50 : vector<1x256xi32>
    %52 = arith.andi %47, %51 : vector<1x256xi1>
    %53 = arith.extui %52 : vector<1x256xi1> to vector<1x256xi32>
    %54 = arith.sitofp %53 : vector<1x256xi32> to vector<1x256xf32>
    %55 = vector.shape_cast %54 : vector<1x256xf32> to vector<1x256xf32>
    %56 = vector.broadcast %55 : vector<1x256xf32> to vector<8x256xf32>
    %c-3_i32 = arith.constant -3 : i32
    %57 = vector.broadcast %c-3_i32 : i32 to vector<1x256xi32>
    %58 = arith.addi %4, %57 : vector<1x256xi32>
    %c0_i32_15 = arith.constant 0 : i32
    %59 = vector.broadcast %c0_i32_15 : i32 to vector<1x256xi32>
    %60 = arith.cmpi sge, %58, %59 : vector<1x256xi32>
    %c-3_i32_16 = arith.constant -3 : i32
    %61 = vector.broadcast %c-3_i32_16 : i32 to vector<1x256xi32>
    %62 = arith.addi %4, %61 : vector<1x256xi32>
    %c16_i32_17 = arith.constant 16 : i32
    %63 = vector.broadcast %c16_i32_17 : i32 to vector<1x256xi32>
    %64 = arith.cmpi slt, %62, %63 : vector<1x256xi32>
    %65 = arith.andi %60, %64 : vector<1x256xi1>
    %66 = arith.extui %65 : vector<1x256xi1> to vector<1x256xi32>
    %67 = arith.sitofp %66 : vector<1x256xi32> to vector<1x256xf32>
    %68 = vector.shape_cast %67 : vector<1x256xf32> to vector<1x256xf32>
    %69 = vector.broadcast %68 : vector<1x256xf32> to vector<8x256xf32>
    %c3_i32 = arith.constant 3 : i32
    %70 = vector.broadcast %c3_i32 : i32 to vector<1x256xi32>
    %71 = arith.addi %4, %70 : vector<1x256xi32>
    %c0_i32_18 = arith.constant 0 : i32
    %72 = vector.broadcast %c0_i32_18 : i32 to vector<1x256xi32>
    %73 = arith.cmpi sge, %71, %72 : vector<1x256xi32>
    %c3_i32_19 = arith.constant 3 : i32
    %74 = vector.broadcast %c3_i32_19 : i32 to vector<1x256xi32>
    %75 = arith.addi %4, %74 : vector<1x256xi32>
    %c16_i32_20 = arith.constant 16 : i32
    %76 = vector.broadcast %c16_i32_20 : i32 to vector<1x256xi32>
    %77 = arith.cmpi slt, %75, %76 : vector<1x256xi32>
    %78 = arith.andi %73, %77 : vector<1x256xi1>
    %79 = arith.extui %78 : vector<1x256xi1> to vector<1x256xi32>
    %80 = arith.sitofp %79 : vector<1x256xi32> to vector<1x256xf32>
    %81 = vector.shape_cast %80 : vector<1x256xf32> to vector<1x256xf32>
    %82 = vector.broadcast %81 : vector<1x256xf32> to vector<8x256xf32>
    %c0_21 = arith.constant 0 : index
    %c0_22 = arith.constant 0 : index
    %c0_23 = arith.constant 0 : index
    %83 = vector.load %arg1[%c0_21, %c0_22, %c0_23] : memref<2x16x256xf32, #tpu.memory_space<vmem>>, vector<1x16x256xf32>
    %84 = vector.shape_cast %83 : vector<1x16x256xf32> to vector<16x256xf32>
    %c0_24 = arith.constant 0 : index
    %c0_25 = arith.constant 0 : index
    %85 = vector.load %arg3[%c0_24, %c0_25] : memref<16x16xf32, #tpu.memory_space<vmem>>, vector<16x16xf32>
    %cst_26 = arith.constant dense<0.000000e+00> : vector<16x256xf32>
    %86 = tpu.matmul %85, %84, %cst_26 {dimension_numbers = #tpu.dot_dimension_numbers<[1], [0], [0], [1], [0, 0, 1, 1], [], []>} : vector<16x16xf32>, vector<16x256xf32>, vector<16x256xf32> -> vector<16x256xf32>
    %c0_27 = arith.constant 0 : index
    %c0_28 = arith.constant 0 : index
    %87 = vector.load %arg4[%c0_27, %c0_28] : memref<16x1xf32, #tpu.memory_space<vmem>>, vector<16x1xf32>
    %88 = vector.broadcast %87 : vector<16x1xf32> to vector<16x256xf32>
    %89 = arith.addf %86, %88 : vector<16x256xf32>
    %90 = vector.extract_strided_slice %89 {offsets = [0, 0], sizes = [8, 256], strides = [1, 1]} : vector<16x256xf32> to vector<8x256xf32>
    %91 = vector.extract_strided_slice %89 {offsets = [8, 0], sizes = [8, 256], strides = [1, 1]} : vector<16x256xf32> to vector<8x256xf32>
    %c0_29 = arith.constant 0 : index
    %c128 = arith.constant 128 : index
    %92 = vector.load %arg8[%c0_29, %c128] : memref<8x435xf32, #tpu.memory_space<vmem>>, vector<8x256xf32>
    tpu.vector_store %arg8[%c0_29, %c128], %90 {strides = array<i32>} : memref<8x435xf32, #tpu.memory_space<vmem>>, vector<8x256xf32>,
    %c0_30 = arith.constant 0 : index
    %c0_31 = arith.constant 0 : index
    %93 = vector.load %arg5[%c0_30, %c0_31] : memref<8x216xf32, #tpu.memory_space<vmem>>, vector<8x216xf32>
    %c0_32 = arith.constant 0 : index
    %c0_33 = arith.constant 0 : index
    %c0_34 = arith.constant 0 : index
    %94 = vector.load %arg2[%c0_32, %c0_33, %c0_34] : memref<2x1x216xf32, #tpu.memory_space<vmem>>, vector<1x1x216xf32>
    %95 = vector.shape_cast %94 : vector<1x1x216xf32> to vector<1x216xf32>
    %96 = vector.broadcast %95 : vector<1x216xf32> to vector<8x216xf32>
    %97 = arith.mulf %93, %96 : vector<8x216xf32>
    %c0_35 = arith.constant 0 : index
    %c111 = arith.constant 111 : index
    %98 = vector.load %arg8[%c0_35, %c111] : memref<8x435xf32, #tpu.memory_space<vmem>>, vector<8x256xf32>
    %99 = arith.mulf %98, %17 : vector<8x256xf32>
    %c0_36 = arith.constant 0 : index
    %c0_37 = arith.constant 0 : index
    %100 = vector.load %arg9[%c0_36, %c0_37] : memref<216x256xf32, #tpu.memory_space<vmem>>, vector<8x256xf32>
    tpu.vector_store %arg9[%c0_36, %c0_37], %99 {strides = array<i32>} : memref<216x256xf32, #tpu.memory_space<vmem>>, vector<8x256xf32>,
    %c0_38 = arith.constant 0 : index
    %c112 = arith.constant 112 : index
    %101 = vector.load %arg8[%c0_38, %c112] : memref<8x435xf32, #tpu.memory_space<vmem>>, vector<8x256xf32>
    %c8 = arith.constant 8 : index
    %c0_39 = arith.constant 0 : index
    %102 = vector.load %arg9[%c8, %c0_39] : memref<216x256xf32, #tpu.memory_space<vmem>>, vector<8x256xf32>
    tpu.vector_store %arg9[%c8, %c0_39], %101 {strides = array<i32>} : memref<216x256xf32, #tpu.memory_space<vmem>>, vector<8x256xf32>,
    %c0_40 = arith.constant 0 : index
    %c113 = arith.constant 113 : index
    %103 = vector.load %arg8[%c0_40, %c113] : memref<8x435xf32, #tpu.memory_space<vmem>>, vector<8x256xf32>
    %104 = arith.mulf %103, %30 : vector<8x256xf32>
    %c16 = arith.constant 16 : index
    %c0_41 = arith.constant 0 : index
    %105 = vector.load %arg9[%c16, %c0_41] : memref<216x256xf32, #tpu.memory_space<vmem>>, vector<8x256xf32>
    tpu.vector_store %arg9[%c16, %c0_41], %104 {strides = array<i32>} : memref<216x256xf32, #tpu.memory_space<vmem>>, vector<8x256xf32>,
    %c0_42 = arith.constant 0 : index
    %c127 = arith.constant 127 : index
    %106 = vector.load %arg8[%c0_42, %c127] : memref<8x435xf32, #tpu.memory_space<vmem>>, vector<8x256xf32>
    %107 = arith.mulf %106, %17 : vector<8x256xf32>
    %c24 = arith.constant 24 : index
    %c0_43 = arith.constant 0 : index
    %108 = vector.load %arg9[%c24, %c0_43] : memref<216x256xf32, #tpu.memory_space<vmem>>, vector<8x256xf32>
    tpu.vector_store %arg9[%c24, %c0_43], %107 {strides = array<i32>} : memref<216x256xf32, #tpu.memory_space<vmem>>, vector<8x256xf32>,
    %c0_44 = arith.constant 0 : index
    %c128_45 = arith.constant 128 : index
    %109 = vector.load %arg8[%c0_44, %c128_45] : memref<8x435xf32, #tpu.memory_space<vmem>>, vector<8x256xf32>
    %c32 = arith.constant 32 : index
    %c0_46 = arith.constant 0 : index
    %110 = vector.load %arg9[%c32, %c0_46] : memref<216x256xf32, #tpu.memory_space<vmem>>, vector<8x256xf32>
    tpu.vector_store %arg9[%c32, %c0_46], %109 {strides = array<i32>} : memref<216x256xf32, #tpu.memory_space<vmem>>, vector<8x256xf32>,
    %c0_47 = arith.constant 0 : index
    %c129 = arith.constant 129 : index
    %111 = vector.load %arg8[%c0_47, %c129] : memref<8x435xf32, #tpu.memory_space<vmem>>, vector<8x256xf32>
    %112 = arith.mulf %111, %30 : vector<8x256xf32>
    %c40 = arith.constant 40 : index
    %c0_48 = arith.constant 0 : index
    %113 = vector.load %arg9[%c40, %c0_48] : memref<216x256xf32, #tpu.memory_space<vmem>>, vector<8x256xf32>
    tpu.vector_store %arg9[%c40, %c0_48], %112 {strides = array<i32>} : memref<216x256xf32, #tpu.memory_space<vmem>>, vector<8x256xf32>,
    %c0_49 = arith.constant 0 : index
    %c143 = arith.constant 143 : index
    %114 = vector.load %arg8[%c0_49, %c143] : memref<8x435xf32, #tpu.memory_space<vmem>>, vector<8x256xf32>
    %115 = arith.mulf %114, %17 : vector<8x256xf32>
    %c48 = arith.constant 48 : index
    %c0_50 = arith.constant 0 : index
    %116 = vector.load %arg9[%c48, %c0_50] : memref<216x256xf32, #tpu.memory_space<vmem>>, vector<8x256xf32>
    tpu.vector_store %arg9[%c48, %c0_50], %115 {strides = array<i32>} : memref<216x256xf32, #tpu.memory_space<vmem>>, vector<8x256xf32>,
    %c0_51 = arith.constant 0 : index
    %c144 = arith.constant 144 : index
    %117 = vector.load %arg8[%c0_51, %c144] : memref<8x435xf32, #tpu.memory_space<vmem>>, vector<8x256xf32>
    %c56 = arith.constant 56 : index
    %c0_52 = arith.constant 0 : index
    %118 = vector.load %arg9[%c56, %c0_52] : memref<216x256xf32, #tpu.memory_space<vmem>>, vector<8x256xf32>
    tpu.vector_store %arg9[%c56, %c0_52], %117 {strides = array<i32>} : memref<216x256xf32, #tpu.memory_space<vmem>>, vector<8x256xf32>,
    %c0_53 = arith.constant 0 : index
    %c145 = arith.constant 145 : index
    %119 = vector.load %arg8[%c0_53, %c145] : memref<8x435xf32, #tpu.memory_space<vmem>>, vector<8x256xf32>
    %120 = arith.mulf %119, %30 : vector<8x256xf32>
    %c64 = arith.constant 64 : index
    %c0_54 = arith.constant 0 : index
    %121 = vector.load %arg9[%c64, %c0_54] : memref<216x256xf32, #tpu.memory_space<vmem>>, vector<8x256xf32>
    tpu.vector_store %arg9[%c64, %c0_54], %120 {strides = array<i32>} : memref<216x256xf32, #tpu.memory_space<vmem>>, vector<8x256xf32>,
    %c0_55 = arith.constant 0 : index
    %c94 = arith.constant 94 : index
    %122 = vector.load %arg8[%c0_55, %c94] : memref<8x435xf32, #tpu.memory_space<vmem>>, vector<8x256xf32>
    %123 = arith.mulf %122, %43 : vector<8x256xf32>
    %c72 = arith.constant 72 : index
    %c0_56 = arith.constant 0 : index
    %124 = vector.load %arg9[%c72, %c0_56] : memref<216x256xf32, #tpu.memory_space<vmem>>, vector<8x256xf32>
    tpu.vector_store %arg9[%c72, %c0_56], %123 {strides = array<i32>} : memref<216x256xf32, #tpu.memory_space<vmem>>, vector<8x256xf32>,
    %c0_57 = arith.constant 0 : index
    %c96 = arith.constant 96 : index
    %125 = vector.load %arg8[%c0_57, %c96] : memref<8x435xf32, #tpu.memory_space<vmem>>, vector<8x256xf32>
    %c80 = arith.constant 80 : index
    %c0_58 = arith.constant 0 : index
    %126 = vector.load %arg9[%c80, %c0_58] : memref<216x256xf32, #tpu.memory_space<vmem>>, vector<8x256xf32>
    tpu.vector_store %arg9[%c80, %c0_58], %125 {strides = array<i32>} : memref<216x256xf32, #tpu.memory_space<vmem>>, vector<8x256xf32>,
    %c0_59 = arith.constant 0 : index
    %c98 = arith.constant 98 : index
    %127 = vector.load %arg8[%c0_59, %c98] : memref<8x435xf32, #tpu.memory_space<vmem>>, vector<8x256xf32>
    %128 = arith.mulf %127, %56 : vector<8x256xf32>
    %c88 = arith.constant 88 : index
    %c0_60 = arith.constant 0 : index
    %129 = vector.load %arg9[%c88, %c0_60] : memref<216x256xf32, #tpu.memory_space<vmem>>, vector<8x256xf32>
    tpu.vector_store %arg9[%c88, %c0_60], %128 {strides = array<i32>} : memref<216x256xf32, #tpu.memory_space<vmem>>, vector<8x256xf32>,
    %c0_61 = arith.constant 0 : index
    %c126 = arith.constant 126 : index
    %130 = vector.load %arg8[%c0_61, %c126] : memref<8x435xf32, #tpu.memory_space<vmem>>, vector<8x256xf32>
    %131 = arith.mulf %130, %43 : vector<8x256xf32>
    %c96_62 = arith.constant 96 : index
    %c0_63 = arith.constant 0 : index
    %132 = vector.load %arg9[%c96_62, %c0_63] : memref<216x256xf32, #tpu.memory_space<vmem>>, vector<8x256xf32>
    tpu.vector_store %arg9[%c96_62, %c0_63], %131 {strides = array<i32>} : memref<216x256xf32, #tpu.memory_space<vmem>>, vector<8x256xf32>,
    %c0_64 = arith.constant 0 : index
    %c128_65 = arith.constant 128 : index
    %133 = vector.load %arg8[%c0_64, %c128_65] : memref<8x435xf32, #tpu.memory_space<vmem>>, vector<8x256xf32>
    %c104 = arith.constant 104 : index
    %c0_66 = arith.constant 0 : index
    %134 = vector.load %arg9[%c104, %c0_66] : memref<216x256xf32, #tpu.memory_space<vmem>>, vector<8x256xf32>
    tpu.vector_store %arg9[%c104, %c0_66], %133 {strides = array<i32>} : memref<216x256xf32, #tpu.memory_space<vmem>>, vector<8x256xf32>,
    %c0_67 = arith.constant 0 : index
    %c130 = arith.constant 130 : index
    %135 = vector.load %arg8[%c0_67, %c130] : memref<8x435xf32, #tpu.memory_space<vmem>>, vector<8x256xf32>
    %136 = arith.mulf %135, %56 : vector<8x256xf32>
    %c112_68 = arith.constant 112 : index
    %c0_69 = arith.constant 0 : index
    %137 = vector.load %arg9[%c112_68, %c0_69] : memref<216x256xf32, #tpu.memory_space<vmem>>, vector<8x256xf32>
    tpu.vector_store %arg9[%c112_68, %c0_69], %136 {strides = array<i32>} : memref<216x256xf32, #tpu.memory_space<vmem>>, vector<8x256xf32>,
    %c0_70 = arith.constant 0 : index
    %c158 = arith.constant 158 : index
    %138 = vector.load %arg8[%c0_70, %c158] : memref<8x435xf32, #tpu.memory_space<vmem>>, vector<8x256xf32>
    %139 = arith.mulf %138, %43 : vector<8x256xf32>
    %c120 = arith.constant 120 : index
    %c0_71 = arith.constant 0 : index
    %140 = vector.load %arg9[%c120, %c0_71] : memref<216x256xf32, #tpu.memory_space<vmem>>, vector<8x256xf32>
    tpu.vector_store %arg9[%c120, %c0_71], %139 {strides = array<i32>} : memref<216x256xf32, #tpu.memory_space<vmem>>, vector<8x256xf32>,
    %c0_72 = arith.constant 0 : index
    %c160 = arith.constant 160 : index
    %141 = vector.load %arg8[%c0_72, %c160] : memref<8x435xf32, #tpu.memory_space<vmem>>, vector<8x256xf32>
    %c128_73 = arith.constant 128 : index
    %c0_74 = arith.constant 0 : index
    %142 = vector.load %arg9[%c128_73, %c0_74] : memref<216x256xf32, #tpu.memory_space<vmem>>, vector<8x256xf32>
    tpu.vector_store %arg9[%c128_73, %c0_74], %141 {strides = array<i32>} : memref<216x256xf32, #tpu.memory_space<vmem>>, vector<8x256xf32>,
    %c0_75 = arith.constant 0 : index
    %c162 = arith.constant 162 : index
    %143 = vector.load %arg8[%c0_75, %c162] : memref<8x435xf32, #tpu.memory_space<vmem>>, vector<8x256xf32>
    %144 = arith.mulf %143, %56 : vector<8x256xf32>
    %c136 = arith.constant 136 : index
    %c0_76 = arith.constant 0 : index
    %145 = vector.load %arg9[%c136, %c0_76] : memref<216x256xf32, #tpu.memory_space<vmem>>, vector<8x256xf32>
    tpu.vector_store %arg9[%c136, %c0_76], %144 {strides = array<i32>} : memref<216x256xf32, #tpu.memory_space<vmem>>, vector<8x256xf32>,
    %c0_77 = arith.constant 0 : index
    %c77 = arith.constant 77 : index
    %146 = vector.load %arg8[%c0_77, %c77] : memref<8x435xf32, #tpu.memory_space<vmem>>, vector<8x256xf32>
    %147 = arith.mulf %146, %69 : vector<8x256xf32>
    %c144_78 = arith.constant 144 : index
    %c0_79 = arith.constant 0 : index
    %148 = vector.load %arg9[%c144_78, %c0_79] : memref<216x256xf32, #tpu.memory_space<vmem>>, vector<8x256xf32>
    tpu.vector_store %arg9[%c144_78, %c0_79], %147 {strides = array<i32>} : memref<216x256xf32, #tpu.memory_space<vmem>>, vector<8x256xf32>,
    %c0_80 = arith.constant 0 : index
    %c80_81 = arith.constant 80 : index
    %149 = vector.load %arg8[%c0_80, %c80_81] : memref<8x435xf32, #tpu.memory_space<vmem>>, vector<8x256xf32>
    %c152 = arith.constant 152 : index
    %c0_82 = arith.constant 0 : index
    %150 = vector.load %arg9[%c152, %c0_82] : memref<216x256xf32, #tpu.memory_space<vmem>>, vector<8x256xf32>
    tpu.vector_store %arg9[%c152, %c0_82], %149 {strides = array<i32>} : memref<216x256xf32, #tpu.memory_space<vmem>>, vector<8x256xf32>,
    %c0_83 = arith.constant 0 : index
    %c83 = arith.constant 83 : index
    %151 = vector.load %arg8[%c0_83, %c83] : memref<8x435xf32, #tpu.memory_space<vmem>>, vector<8x256xf32>
    %152 = arith.mulf %151, %82 : vector<8x256xf32>
    %c160_84 = arith.constant 160 : index
    %c0_85 = arith.constant 0 : index
    %153 = vector.load %arg9[%c160_84, %c0_85] : memref<216x256xf32, #tpu.memory_space<vmem>>, vector<8x256xf32>
    tpu.vector_store %arg9[%c160_84, %c0_85], %152 {strides = array<i32>} : memref<216x256xf32, #tpu.memory_space<vmem>>, vector<8x256xf32>,
    %c0_86 = arith.constant 0 : index
    %c125 = arith.constant 125 : index
    %154 = vector.load %arg8[%c0_86, %c125] : memref<8x435xf32, #tpu.memory_space<vmem>>, vector<8x256xf32>
    %155 = arith.mulf %154, %69 : vector<8x256xf32>
    %c168 = arith.constant 168 : index
    %c0_87 = arith.constant 0 : index
    %156 = vector.load %arg9[%c168, %c0_87] : memref<216x256xf32, #tpu.memory_space<vmem>>, vector<8x256xf32>
    tpu.vector_store %arg9[%c168, %c0_87], %155 {strides = array<i32>} : memref<216x256xf32, #tpu.memory_space<vmem>>, vector<8x256xf32>,
    %c0_88 = arith.constant 0 : index
    %c128_89 = arith.constant 128 : index
    %157 = vector.load %arg8[%c0_88, %c128_89] : memref<8x435xf32, #tpu.memory_space<vmem>>, vector<8x256xf32>
    %c176 = arith.constant 176 : index
    %c0_90 = arith.constant 0 : index
    %158 = vector.load %arg9[%c176, %c0_90] : memref<216x256xf32, #tpu.memory_space<vmem>>, vector<8x256xf32>
    tpu.vector_store %arg9[%c176, %c0_90], %157 {strides = array<i32>} : memref<216x256xf32, #tpu.memory_space<vmem>>, vector<8x256xf32>,
    %c0_91 = arith.constant 0 : index
    %c131 = arith.constant 131 : index
    %159 = vector.load %arg8[%c0_91, %c131] : memref<8x435xf32, #tpu.memory_space<vmem>>, vector<8x256xf32>
    %160 = arith.mulf %159, %82 : vector<8x256xf32>
    %c184 = arith.constant 184 : index
    %c0_92 = arith.constant 0 : index
    %161 = vector.load %arg9[%c184, %c0_92] : memref<216x256xf32, #tpu.memory_space<vmem>>, vector<8x256xf32>
    tpu.vector_store %arg9[%c184, %c0_92], %160 {strides = array<i32>} : memref<216x256xf32, #tpu.memory_space<vmem>>, vector<8x256xf32>,
    %c0_93 = arith.constant 0 : index
    %c173 = arith.constant 173 : index
    %162 = vector.load %arg8[%c0_93, %c173] : memref<8x435xf32, #tpu.memory_space<vmem>>, vector<8x256xf32>
    %163 = arith.mulf %162, %69 : vector<8x256xf32>
    %c192 = arith.constant 192 : index
    %c0_94 = arith.constant 0 : index
    %164 = vector.load %arg9[%c192, %c0_94] : memref<216x256xf32, #tpu.memory_space<vmem>>, vector<8x256xf32>
    tpu.vector_store %arg9[%c192, %c0_94], %163 {strides = array<i32>} : memref<216x256xf32, #tpu.memory_space<vmem>>, vector<8x256xf32>,
    %c0_95 = arith.constant 0 : index
    %c176_96 = arith.constant 176 : index
    %165 = vector.load %arg8[%c0_95, %c176_96] : memref<8x435xf32, #tpu.memory_space<vmem>>, vector<8x256xf32>
    %c200 = arith.constant 200 : index
    %c0_97 = arith.constant 0 : index
    %166 = vector.load %arg9[%c200, %c0_97] : memref<216x256xf32, #tpu.memory_space<vmem>>, vector<8x256xf32>
    tpu.vector_store %arg9[%c200, %c0_97], %165 {strides = array<i32>} : memref<216x256xf32, #tpu.memory_space<vmem>>, vector<8x256xf32>,
    %c0_98 = arith.constant 0 : index
    %c179 = arith.constant 179 : index
    %167 = vector.load %arg8[%c0_98, %c179] : memref<8x435xf32, #tpu.memory_space<vmem>>, vector<8x256xf32>
    %168 = arith.mulf %167, %82 : vector<8x256xf32>
    %c208 = arith.constant 208 : index
    %c0_99 = arith.constant 0 : index
    %169 = vector.load %arg9[%c208, %c0_99] : memref<216x256xf32, #tpu.memory_space<vmem>>, vector<8x256xf32>
    tpu.vector_store %arg9[%c208, %c0_99], %168 {strides = array<i32>} : memref<216x256xf32, #tpu.memory_space<vmem>>, vector<8x256xf32>,
    %c0_100 = arith.constant 0 : index
    %c0_101 = arith.constant 0 : index
    %170 = vector.load %arg9[%c0_100, %c0_101] : memref<216x256xf32, #tpu.memory_space<vmem>>, vector<216x256xf32>
    %cst_102 = arith.constant dense<0.000000e+00> : vector<8x256xf32>
    %171 = tpu.matmul %97, %170, %cst_102 {dimension_numbers = #tpu.dot_dimension_numbers<[1], [0], [0], [1], [0, 0, 1, 1], [], []>} : vector<8x216xf32>, vector<216x256xf32>, vector<8x256xf32> -> vector<8x256xf32>
    %172 = arith.addf %91, %171 : vector<8x256xf32>
    %c0_103 = arith.constant 0 : index
    %c0_104 = arith.constant 0 : index
    %c0_105 = arith.constant 0 : index
    %173 = vector.load %arg7[%c0_103, %c0_104, %c0_105] : memref<2x8x256xf32, #tpu.memory_space<vmem>>, vector<1x8x256xf32>
    %174 = vector.shape_cast %173 : vector<1x8x256xf32> to vector<8x256xf32>
    %175 = vector.shape_cast %172 : vector<8x256xf32> to vector<1x8x256xf32>
    tpu.vector_store %arg7[%c0_103, %c0_104, %c0_105], %175 {strides = array<i32>} : memref<2x8x256xf32, #tpu.memory_space<vmem>>, vector<1x8x256xf32>,
    %c1 = arith.constant 1 : index
    %c0_106 = arith.constant 0 : index
    %c0_107 = arith.constant 0 : index
    %176 = vector.load %arg1[%c1, %c0_106, %c0_107] : memref<2x16x256xf32, #tpu.memory_space<vmem>>, vector<1x16x256xf32>
    %177 = vector.shape_cast %176 : vector<1x16x256xf32> to vector<16x256xf32>
    %c0_108 = arith.constant 0 : index
    %c0_109 = arith.constant 0 : index
    %178 = vector.load %arg3[%c0_108, %c0_109] : memref<16x16xf32, #tpu.memory_space<vmem>>, vector<16x16xf32>
    %cst_110 = arith.constant dense<0.000000e+00> : vector<16x256xf32>
    %179 = tpu.matmul %178, %177, %cst_110 {dimension_numbers = #tpu.dot_dimension_numbers<[1], [0], [0], [1], [0, 0, 1, 1], [], []>} : vector<16x16xf32>, vector<16x256xf32>, vector<16x256xf32> -> vector<16x256xf32>
    %c0_111 = arith.constant 0 : index
    %c0_112 = arith.constant 0 : index
    %180 = vector.load %arg4[%c0_111, %c0_112] : memref<16x1xf32, #tpu.memory_space<vmem>>, vector<16x1xf32>
    %181 = vector.broadcast %180 : vector<16x1xf32> to vector<16x256xf32>
    %182 = arith.addf %179, %181 : vector<16x256xf32>
    %183 = vector.extract_strided_slice %182 {offsets = [0, 0], sizes = [8, 256], strides = [1, 1]} : vector<16x256xf32> to vector<8x256xf32>
    %184 = vector.extract_strided_slice %182 {offsets = [8, 0], sizes = [8, 256], strides = [1, 1]} : vector<16x256xf32> to vector<8x256xf32>
    %c0_113 = arith.constant 0 : index
    %c128_114 = arith.constant 128 : index
    %185 = vector.load %arg8[%c0_113, %c128_114] : memref<8x435xf32, #tpu.memory_space<vmem>>, vector<8x256xf32>
    tpu.vector_store %arg8[%c0_113, %c128_114], %183 {strides = array<i32>} : memref<8x435xf32, #tpu.memory_space<vmem>>, vector<8x256xf32>,
    %c0_115 = arith.constant 0 : index
    %c0_116 = arith.constant 0 : index
    %186 = vector.load %arg5[%c0_115, %c0_116] : memref<8x216xf32, #tpu.memory_space<vmem>>, vector<8x216xf32>
    %c1_117 = arith.constant 1 : index
    %c0_118 = arith.constant 0 : index
    %c0_119 = arith.constant 0 : index
    %187 = vector.load %arg2[%c1_117, %c0_118, %c0_119] : memref<2x1x216xf32, #tpu.memory_space<vmem>>, vector<1x1x216xf32>
    %188 = vector.shape_cast %187 : vector<1x1x216xf32> to vector<1x216xf32>
    %189 = vector.broadcast %188 : vector<1x216xf32> to vector<8x216xf32>
    %190 = arith.mulf %186, %189 : vector<8x216xf32>
    %c0_120 = arith.constant 0 : index
    %c111_121 = arith.constant 111 : index
    %191 = vector.load %arg8[%c0_120, %c111_121] : memref<8x435xf32, #tpu.memory_space<vmem>>, vector<8x256xf32>
    %192 = arith.mulf %191, %17 : vector<8x256xf32>
    %c0_122 = arith.constant 0 : index
    %c0_123 = arith.constant 0 : index
    %193 = vector.load %arg9[%c0_122, %c0_123] : memref<216x256xf32, #tpu.memory_space<vmem>>, vector<8x256xf32>
    tpu.vector_store %arg9[%c0_122, %c0_123], %192 {strides = array<i32>} : memref<216x256xf32, #tpu.memory_space<vmem>>, vector<8x256xf32>,
    %c0_124 = arith.constant 0 : index
    %c112_125 = arith.constant 112 : index
    %194 = vector.load %arg8[%c0_124, %c112_125] : memref<8x435xf32, #tpu.memory_space<vmem>>, vector<8x256xf32>
    %c8_126 = arith.constant 8 : index
    %c0_127 = arith.constant 0 : index
    %195 = vector.load %arg9[%c8_126, %c0_127] : memref<216x256xf32, #tpu.memory_space<vmem>>, vector<8x256xf32>
    tpu.vector_store %arg9[%c8_126, %c0_127], %194 {strides = array<i32>} : memref<216x256xf32, #tpu.memory_space<vmem>>, vector<8x256xf32>,
    %c0_128 = arith.constant 0 : index
    %c113_129 = arith.constant 113 : index
    %196 = vector.load %arg8[%c0_128, %c113_129] : memref<8x435xf32, #tpu.memory_space<vmem>>, vector<8x256xf32>
    %197 = arith.mulf %196, %30 : vector<8x256xf32>
    %c16_130 = arith.constant 16 : index
    %c0_131 = arith.constant 0 : index
    %198 = vector.load %arg9[%c16_130, %c0_131] : memref<216x256xf32, #tpu.memory_space<vmem>>, vector<8x256xf32>
    tpu.vector_store %arg9[%c16_130, %c0_131], %197 {strides = array<i32>} : memref<216x256xf32, #tpu.memory_space<vmem>>, vector<8x256xf32>,
    %c0_132 = arith.constant 0 : index
    %c127_133 = arith.constant 127 : index
    %199 = vector.load %arg8[%c0_132, %c127_133] : memref<8x435xf32, #tpu.memory_space<vmem>>, vector<8x256xf32>
    %200 = arith.mulf %199, %17 : vector<8x256xf32>
    %c24_134 = arith.constant 24 : index
    %c0_135 = arith.constant 0 : index
    %201 = vector.load %arg9[%c24_134, %c0_135] : memref<216x256xf32, #tpu.memory_space<vmem>>, vector<8x256xf32>
    tpu.vector_store %arg9[%c24_134, %c0_135], %200 {strides = array<i32>} : memref<216x256xf32, #tpu.memory_space<vmem>>, vector<8x256xf32>,
    %c0_136 = arith.constant 0 : index
    %c128_137 = arith.constant 128 : index
    %202 = vector.load %arg8[%c0_136, %c128_137] : memref<8x435xf32, #tpu.memory_space<vmem>>, vector<8x256xf32>
    %c32_138 = arith.constant 32 : index
    %c0_139 = arith.constant 0 : index
    %203 = vector.load %arg9[%c32_138, %c0_139] : memref<216x256xf32, #tpu.memory_space<vmem>>, vector<8x256xf32>
    tpu.vector_store %arg9[%c32_138, %c0_139], %202 {strides = array<i32>} : memref<216x256xf32, #tpu.memory_space<vmem>>, vector<8x256xf32>,
    %c0_140 = arith.constant 0 : index
    %c129_141 = arith.constant 129 : index
    %204 = vector.load %arg8[%c0_140, %c129_141] : memref<8x435xf32, #tpu.memory_space<vmem>>, vector<8x256xf32>
    %205 = arith.mulf %204, %30 : vector<8x256xf32>
    %c40_142 = arith.constant 40 : index
    %c0_143 = arith.constant 0 : index
    %206 = vector.load %arg9[%c40_142, %c0_143] : memref<216x256xf32, #tpu.memory_space<vmem>>, vector<8x256xf32>
    tpu.vector_store %arg9[%c40_142, %c0_143], %205 {strides = array<i32>} : memref<216x256xf32, #tpu.memory_space<vmem>>, vector<8x256xf32>,
    %c0_144 = arith.constant 0 : index
    %c143_145 = arith.constant 143 : index
    %207 = vector.load %arg8[%c0_144, %c143_145] : memref<8x435xf32, #tpu.memory_space<vmem>>, vector<8x256xf32>
    %208 = arith.mulf %207, %17 : vector<8x256xf32>
    %c48_146 = arith.constant 48 : index
    %c0_147 = arith.constant 0 : index
    %209 = vector.load %arg9[%c48_146, %c0_147] : memref<216x256xf32, #tpu.memory_space<vmem>>, vector<8x256xf32>
    tpu.vector_store %arg9[%c48_146, %c0_147], %208 {strides = array<i32>} : memref<216x256xf32, #tpu.memory_space<vmem>>, vector<8x256xf32>,
    %c0_148 = arith.constant 0 : index
    %c144_149 = arith.constant 144 : index
    %210 = vector.load %arg8[%c0_148, %c144_149] : memref<8x435xf32, #tpu.memory_space<vmem>>, vector<8x256xf32>
    %c56_150 = arith.constant 56 : index
    %c0_151 = arith.constant 0 : index
    %211 = vector.load %arg9[%c56_150, %c0_151] : memref<216x256xf32, #tpu.memory_space<vmem>>, vector<8x256xf32>
    tpu.vector_store %arg9[%c56_150, %c0_151], %210 {strides = array<i32>} : memref<216x256xf32, #tpu.memory_space<vmem>>, vector<8x256xf32>,
    %c0_152 = arith.constant 0 : index
    %c145_153 = arith.constant 145 : index
    %212 = vector.load %arg8[%c0_152, %c145_153] : memref<8x435xf32, #tpu.memory_space<vmem>>, vector<8x256xf32>
    %213 = arith.mulf %212, %30 : vector<8x256xf32>
    %c64_154 = arith.constant 64 : index
    %c0_155 = arith.constant 0 : index
    %214 = vector.load %arg9[%c64_154, %c0_155] : memref<216x256xf32, #tpu.memory_space<vmem>>, vector<8x256xf32>
    tpu.vector_store %arg9[%c64_154, %c0_155], %213 {strides = array<i32>} : memref<216x256xf32, #tpu.memory_space<vmem>>, vector<8x256xf32>,
    %c0_156 = arith.constant 0 : index
    %c94_157 = arith.constant 94 : index
    %215 = vector.load %arg8[%c0_156, %c94_157] : memref<8x435xf32, #tpu.memory_space<vmem>>, vector<8x256xf32>
    %216 = arith.mulf %215, %43 : vector<8x256xf32>
    %c72_158 = arith.constant 72 : index
    %c0_159 = arith.constant 0 : index
    %217 = vector.load %arg9[%c72_158, %c0_159] : memref<216x256xf32, #tpu.memory_space<vmem>>, vector<8x256xf32>
    tpu.vector_store %arg9[%c72_158, %c0_159], %216 {strides = array<i32>} : memref<216x256xf32, #tpu.memory_space<vmem>>, vector<8x256xf32>,
    %c0_160 = arith.constant 0 : index
    %c96_161 = arith.constant 96 : index
    %218 = vector.load %arg8[%c0_160, %c96_161] : memref<8x435xf32, #tpu.memory_space<vmem>>, vector<8x256xf32>
    %c80_162 = arith.constant 80 : index
    %c0_163 = arith.constant 0 : index
    %219 = vector.load %arg9[%c80_162, %c0_163] : memref<216x256xf32, #tpu.memory_space<vmem>>, vector<8x256xf32>
    tpu.vector_store %arg9[%c80_162, %c0_163], %218 {strides = array<i32>} : memref<216x256xf32, #tpu.memory_space<vmem>>, vector<8x256xf32>,
    %c0_164 = arith.constant 0 : index
    %c98_165 = arith.constant 98 : index
    %220 = vector.load %arg8[%c0_164, %c98_165] : memref<8x435xf32, #tpu.memory_space<vmem>>, vector<8x256xf32>
    %221 = arith.mulf %220, %56 : vector<8x256xf32>
    %c88_166 = arith.constant 88 : index
    %c0_167 = arith.constant 0 : index
    %222 = vector.load %arg9[%c88_166, %c0_167] : memref<216x256xf32, #tpu.memory_space<vmem>>, vector<8x256xf32>
    tpu.vector_store %arg9[%c88_166, %c0_167], %221 {strides = array<i32>} : memref<216x256xf32, #tpu.memory_space<vmem>>, vector<8x256xf32>,
    %c0_168 = arith.constant 0 : index
    %c126_169 = arith.constant 126 : index
    %223 = vector.load %arg8[%c0_168, %c126_169] : memref<8x435xf32, #tpu.memory_space<vmem>>, vector<8x256xf32>
    %224 = arith.mulf %223, %43 : vector<8x256xf32>
    %c96_170 = arith.constant 96 : index
    %c0_171 = arith.constant 0 : index
    %225 = vector.load %arg9[%c96_170, %c0_171] : memref<216x256xf32, #tpu.memory_space<vmem>>, vector<8x256xf32>
    tpu.vector_store %arg9[%c96_170, %c0_171], %224 {strides = array<i32>} : memref<216x256xf32, #tpu.memory_space<vmem>>, vector<8x256xf32>,
    %c0_172 = arith.constant 0 : index
    %c128_173 = arith.constant 128 : index
    %226 = vector.load %arg8[%c0_172, %c128_173] : memref<8x435xf32, #tpu.memory_space<vmem>>, vector<8x256xf32>
    %c104_174 = arith.constant 104 : index
    %c0_175 = arith.constant 0 : index
    %227 = vector.load %arg9[%c104_174, %c0_175] : memref<216x256xf32, #tpu.memory_space<vmem>>, vector<8x256xf32>
    tpu.vector_store %arg9[%c104_174, %c0_175], %226 {strides = array<i32>} : memref<216x256xf32, #tpu.memory_space<vmem>>, vector<8x256xf32>,
    %c0_176 = arith.constant 0 : index
    %c130_177 = arith.constant 130 : index
    %228 = vector.load %arg8[%c0_176, %c130_177] : memref<8x435xf32, #tpu.memory_space<vmem>>, vector<8x256xf32>
    %229 = arith.mulf %228, %56 : vector<8x256xf32>
    %c112_178 = arith.constant 112 : index
    %c0_179 = arith.constant 0 : index
    %230 = vector.load %arg9[%c112_178, %c0_179] : memref<216x256xf32, #tpu.memory_space<vmem>>, vector<8x256xf32>
    tpu.vector_store %arg9[%c112_178, %c0_179], %229 {strides = array<i32>} : memref<216x256xf32, #tpu.memory_space<vmem>>, vector<8x256xf32>,
    %c0_180 = arith.constant 0 : index
    %c158_181 = arith.constant 158 : index
    %231 = vector.load %arg8[%c0_180, %c158_181] : memref<8x435xf32, #tpu.memory_space<vmem>>, vector<8x256xf32>
    %232 = arith.mulf %231, %43 : vector<8x256xf32>
    %c120_182 = arith.constant 120 : index
    %c0_183 = arith.constant 0 : index
    %233 = vector.load %arg9[%c120_182, %c0_183] : memref<216x256xf32, #tpu.memory_space<vmem>>, vector<8x256xf32>
    tpu.vector_store %arg9[%c120_182, %c0_183], %232 {strides = array<i32>} : memref<216x256xf32, #tpu.memory_space<vmem>>, vector<8x256xf32>,
    %c0_184 = arith.constant 0 : index
    %c160_185 = arith.constant 160 : index
    %234 = vector.load %arg8[%c0_184, %c160_185] : memref<8x435xf32, #tpu.memory_space<vmem>>, vector<8x256xf32>
    %c128_186 = arith.constant 128 : index
    %c0_187 = arith.constant 0 : index
    %235 = vector.load %arg9[%c128_186, %c0_187] : memref<216x256xf32, #tpu.memory_space<vmem>>, vector<8x256xf32>
    tpu.vector_store %arg9[%c128_186, %c0_187], %234 {strides = array<i32>} : memref<216x256xf32, #tpu.memory_space<vmem>>, vector<8x256xf32>,
    %c0_188 = arith.constant 0 : index
    %c162_189 = arith.constant 162 : index
    %236 = vector.load %arg8[%c0_188, %c162_189] : memref<8x435xf32, #tpu.memory_space<vmem>>, vector<8x256xf32>
    %237 = arith.mulf %236, %56 : vector<8x256xf32>
    %c136_190 = arith.constant 136 : index
    %c0_191 = arith.constant 0 : index
    %238 = vector.load %arg9[%c136_190, %c0_191] : memref<216x256xf32, #tpu.memory_space<vmem>>, vector<8x256xf32>
    tpu.vector_store %arg9[%c136_190, %c0_191], %237 {strides = array<i32>} : memref<216x256xf32, #tpu.memory_space<vmem>>, vector<8x256xf32>,
    %c0_192 = arith.constant 0 : index
    %c77_193 = arith.constant 77 : index
    %239 = vector.load %arg8[%c0_192, %c77_193] : memref<8x435xf32, #tpu.memory_space<vmem>>, vector<8x256xf32>
    %240 = arith.mulf %239, %69 : vector<8x256xf32>
    %c144_194 = arith.constant 144 : index
    %c0_195 = arith.constant 0 : index
    %241 = vector.load %arg9[%c144_194, %c0_195] : memref<216x256xf32, #tpu.memory_space<vmem>>, vector<8x256xf32>
    tpu.vector_store %arg9[%c144_194, %c0_195], %240 {strides = array<i32>} : memref<216x256xf32, #tpu.memory_space<vmem>>, vector<8x256xf32>,
    %c0_196 = arith.constant 0 : index
    %c80_197 = arith.constant 80 : index
    %242 = vector.load %arg8[%c0_196, %c80_197] : memref<8x435xf32, #tpu.memory_space<vmem>>, vector<8x256xf32>
    %c152_198 = arith.constant 152 : index
    %c0_199 = arith.constant 0 : index
    %243 = vector.load %arg9[%c152_198, %c0_199] : memref<216x256xf32, #tpu.memory_space<vmem>>, vector<8x256xf32>
    tpu.vector_store %arg9[%c152_198, %c0_199], %242 {strides = array<i32>} : memref<216x256xf32, #tpu.memory_space<vmem>>, vector<8x256xf32>,
    %c0_200 = arith.constant 0 : index
    %c83_201 = arith.constant 83 : index
    %244 = vector.load %arg8[%c0_200, %c83_201] : memref<8x435xf32, #tpu.memory_space<vmem>>, vector<8x256xf32>
    %245 = arith.mulf %244, %82 : vector<8x256xf32>
    %c160_202 = arith.constant 160 : index
    %c0_203 = arith.constant 0 : index
    %246 = vector.load %arg9[%c160_202, %c0_203] : memref<216x256xf32, #tpu.memory_space<vmem>>, vector<8x256xf32>
    tpu.vector_store %arg9[%c160_202, %c0_203], %245 {strides = array<i32>} : memref<216x256xf32, #tpu.memory_space<vmem>>, vector<8x256xf32>,
    %c0_204 = arith.constant 0 : index
    %c125_205 = arith.constant 125 : index
    %247 = vector.load %arg8[%c0_204, %c125_205] : memref<8x435xf32, #tpu.memory_space<vmem>>, vector<8x256xf32>
    %248 = arith.mulf %247, %69 : vector<8x256xf32>
    %c168_206 = arith.constant 168 : index
    %c0_207 = arith.constant 0 : index
    %249 = vector.load %arg9[%c168_206, %c0_207] : memref<216x256xf32, #tpu.memory_space<vmem>>, vector<8x256xf32>
    tpu.vector_store %arg9[%c168_206, %c0_207], %248 {strides = array<i32>} : memref<216x256xf32, #tpu.memory_space<vmem>>, vector<8x256xf32>,
    %c0_208 = arith.constant 0 : index
    %c128_209 = arith.constant 128 : index
    %250 = vector.load %arg8[%c0_208, %c128_209] : memref<8x435xf32, #tpu.memory_space<vmem>>, vector<8x256xf32>
    %c176_210 = arith.constant 176 : index
    %c0_211 = arith.constant 0 : index
    %251 = vector.load %arg9[%c176_210, %c0_211] : memref<216x256xf32, #tpu.memory_space<vmem>>, vector<8x256xf32>
    tpu.vector_store %arg9[%c176_210, %c0_211], %250 {strides = array<i32>} : memref<216x256xf32, #tpu.memory_space<vmem>>, vector<8x256xf32>,
    %c0_212 = arith.constant 0 : index
    %c131_213 = arith.constant 131 : index
    %252 = vector.load %arg8[%c0_212, %c131_213] : memref<8x435xf32, #tpu.memory_space<vmem>>, vector<8x256xf32>
    %253 = arith.mulf %252, %82 : vector<8x256xf32>
    %c184_214 = arith.constant 184 : index
    %c0_215 = arith.constant 0 : index
    %254 = vector.load %arg9[%c184_214, %c0_215] : memref<216x256xf32, #tpu.memory_space<vmem>>, vector<8x256xf32>
    tpu.vector_store %arg9[%c184_214, %c0_215], %253 {strides = array<i32>} : memref<216x256xf32, #tpu.memory_space<vmem>>, vector<8x256xf32>,
    %c0_216 = arith.constant 0 : index
    %c173_217 = arith.constant 173 : index
    %255 = vector.load %arg8[%c0_216, %c173_217] : memref<8x435xf32, #tpu.memory_space<vmem>>, vector<8x256xf32>
    %256 = arith.mulf %255, %69 : vector<8x256xf32>
    %c192_218 = arith.constant 192 : index
    %c0_219 = arith.constant 0 : index
    %257 = vector.load %arg9[%c192_218, %c0_219] : memref<216x256xf32, #tpu.memory_space<vmem>>, vector<8x256xf32>
    tpu.vector_store %arg9[%c192_218, %c0_219], %256 {strides = array<i32>} : memref<216x256xf32, #tpu.memory_space<vmem>>, vector<8x256xf32>,
    %c0_220 = arith.constant 0 : index
    %c176_221 = arith.constant 176 : index
    %258 = vector.load %arg8[%c0_220, %c176_221] : memref<8x435xf32, #tpu.memory_space<vmem>>, vector<8x256xf32>
    %c200_222 = arith.constant 200 : index
    %c0_223 = arith.constant 0 : index
    %259 = vector.load %arg9[%c200_222, %c0_223] : memref<216x256xf32, #tpu.memory_space<vmem>>, vector<8x256xf32>
    tpu.vector_store %arg9[%c200_222, %c0_223], %258 {strides = array<i32>} : memref<216x256xf32, #tpu.memory_space<vmem>>, vector<8x256xf32>,
    %c0_224 = arith.constant 0 : index
    %c179_225 = arith.constant 179 : index
    %260 = vector.load %arg8[%c0_224, %c179_225] : memref<8x435xf32, #tpu.memory_space<vmem>>, vector<8x256xf32>
    %261 = arith.mulf %260, %82 : vector<8x256xf32>
    %c208_226 = arith.constant 208 : index
    %c0_227 = arith.constant 0 : index
    %262 = vector.load %arg9[%c208_226, %c0_227] : memref<216x256xf32, #tpu.memory_space<vmem>>, vector<8x256xf32>
    tpu.vector_store %arg9[%c208_226, %c0_227], %261 {strides = array<i32>} : memref<216x256xf32, #tpu.memory_space<vmem>>, vector<8x256xf32>,
    %c0_228 = arith.constant 0 : index
    %c0_229 = arith.constant 0 : index
    %263 = vector.load %arg9[%c0_228, %c0_229] : memref<216x256xf32, #tpu.memory_space<vmem>>, vector<216x256xf32>
    %cst_230 = arith.constant dense<0.000000e+00> : vector<8x256xf32>
    %264 = tpu.matmul %190, %263, %cst_230 {dimension_numbers = #tpu.dot_dimension_numbers<[1], [0], [0], [1], [0, 0, 1, 1], [], []>} : vector<8x216xf32>, vector<216x256xf32>, vector<8x256xf32> -> vector<8x256xf32>
    %265 = arith.addf %184, %264 : vector<8x256xf32>
    %c1_231 = arith.constant 1 : index
    %c0_232 = arith.constant 0 : index
    %c0_233 = arith.constant 0 : index
    %266 = vector.load %arg7[%c1_231, %c0_232, %c0_233] : memref<2x8x256xf32, #tpu.memory_space<vmem>>, vector<1x8x256xf32>
    %267 = vector.shape_cast %266 : vector<1x8x256xf32> to vector<8x256xf32>
    %268 = vector.shape_cast %265 : vector<8x256xf32> to vector<1x8x256xf32>
    tpu.vector_store %arg7[%c1_231, %c0_232, %c0_233], %268 {strides = array<i32>} : memref<2x8x256xf32, #tpu.memory_space<vmem>>, vector<1x8x256xf32>,
    return
  }
  func.func @transform_0(%arg0: i32) -> (i32, i32, i32) {
    %c0_i32 = arith.constant 0 : i32
    %c0_i32_0 = arith.constant 0 : i32
    %c0_i32_1 = arith.constant 0 : i32
    return %arg0, %c0_i32, %c0_i32_0 : i32, i32, i32
  }
  func.func @transform_1(%arg0: i32) -> (i32, i32, i32) {
    %c0_i32 = arith.constant 0 : i32
    %c0_i32_0 = arith.constant 0 : i32
    %c0_i32_1 = arith.constant 0 : i32
    return %arg0, %c0_i32, %c0_i32_0 : i32, i32, i32
  }
  func.func @transform_2(%arg0: i32) -> (i32, i32) {
    %c0_i32 = arith.constant 0 : i32
    %c0_i32_0 = arith.constant 0 : i32
    %c0_i32_1 = arith.constant 0 : i32
    return %c0_i32, %c0_i32_0 : i32, i32
  }
  func.func @transform_3(%arg0: i32) -> (i32, i32) {
    %c0_i32 = arith.constant 0 : i32
    %c0_i32_0 = arith.constant 0 : i32
    %c0_i32_1 = arith.constant 0 : i32
    return %c0_i32, %c0_i32_0 : i32, i32
  }
  func.func @transform_4(%arg0: i32) -> (i32, i32) {
    %c0_i32 = arith.constant 0 : i32
    %c0_i32_0 = arith.constant 0 : i32
    %c0_i32_1 = arith.constant 0 : i32
    return %c0_i32, %c0_i32_0 : i32, i32
  }
  func.func @transform_5(%arg0: i32) -> (i32, i32) {
    %c0_i32 = arith.constant 0 : i32
    %c0_i32_0 = arith.constant 0 : i32
    %c0_i32_1 = arith.constant 0 : i32
    return %c0_i32, %c0_i32_0 : i32, i32
  }
  func.func @transform_6(%arg0: i32) -> (i32, i32, i32) {
    %c0_i32 = arith.constant 0 : i32
    %c0_i32_0 = arith.constant 0 : i32
    %c0_i32_1 = arith.constant 0 : i32
    return %arg0, %c0_i32, %c0_i32_0 : i32, i32, i32
  }
}

</mosaic_0001>

<bundles_post_ra>
// kernel: dcm_forward.1
= control target key start
LH: loop header
LB: loop body
LE: loop exit
PB: predicated region body
PF: predicated region fallthrough
CT: control target
= control target key end

     0   :  { %s2813_s21 = smov 0   ;;  %s3934_s0 = inlined_call_operand.vmem [shape: f32[4,16,256], index: 0, kind: input, shape index: {}]   ;;  %s3935_s1 = inlined_call_operand.vmem [shape: f32[4,1,216], index: 1, kind: input, shape index: {}]   ;;  %s3936_s2 = inlined_call_operand.vmem [shape: f32[16,16], index: 2, kind: input, shape index: {}]   ;;  %s3937_s3 = inlined_call_operand.vmem [shape: f32[16,1], index: 3, kind: input, shape index: {}]   ;;  %s3938_s4 = inlined_call_operand.vmem [shape: f32[8,216], index: 4, kind: input, shape index: {}]   ;;  %s3939_s5 = inlined_call_operand.vmem [shape: s32[1,256], index: 5, kind: input, shape index: {}]   ;;  %s3940_s6 = inlined_call_operand.vmem [shape: f32[4,8,256], index: 6, kind: output, shape index: {}]  }
   0x1 LB: > { %s2115_s22 = sadd.s32 4294967295, %s2750_s21   ;;  %p2119_p0 = scmp.ge.s32.totalorder %s2750_s21, 1  ;;  %s2750_s21 = sphi %s2813_s21, %s16_s21  }
   0x2   : > { %p225_p1 = scmp.lt.s32.totalorder %s2750_s21, 3 }
   0x4   : > { %p226_p2 = pnand %p2119_p0, %p225_p1 }
   0x6   : > { %229 = sbr.rel (%p226_p2) target bundleno = 727 (0x2d7), region = 44 }
   0xd   : > { %s2120_s23 = sshll.u32 %s2115_s22, 1  ;;  %v382_v0 = vld [vmem:[%s3937_s3] sm:$0xff]  ;;  %v293_v1 = vlaneseq  ;;  %v3952_v2 = vmov 0.0   ;;  %v2753_v4 = vmov 0   ;;  %vm394_vm9 = vcmask 130048   ;;  %s2754_s10 = smov 111  }
   0xe   : > { %p263_p3 = scmp.lt.s32.totalorder %s2120_s23, 3  ;;  %465 = vmatprep.mubr.f32.mxu0 %v3952_v2  ;;  %1382 = vmatprep.mubr.f32.mxu1 %v3952_v2  ;;  %v2829_v3 = vld [vmem:[%s3939_s5] sm:$0x3]  ;;  %s2755_s11 = smov 127  }
   0xf   : > { %2305 = vset.pattern.permute.xlu0 %v2753_v4  ;;  %v286_v5 = vadd.s32 4294967295, %v2829_v3  ;;  %v294_v6 = vshrl.u32 %v293_v1, 7  ;;  %v301_v7 = vadd.s32 1, %v2829_v3  ;;  %v316_v8 = vadd.s32 4294967294, %v2829_v3  ;;  %2741 = vset.pattern.permute.xlu1 %v2753_v4  ;;  %v380_v32 = vld [vmem:[%s3936_s2] sm:$0xff]  ;;  %s2756_s12 = smov 113  }
  0x10   : > { %s4085_s23 = smov (!%p263_p3, %s2120_s23), 3  ;;  %386 = vperm.xlu0 %2305, %v382_v0   ;;  %v331_v18 = vadd.s32 2, %v2829_v3  ;;  %v346_v34 = vadd.s32 4294967293, %v2829_v3  ;;  %s2757_s13 = smov 15   ;;  %v361_v39 = vadd.s32 3, %v2829_v3 }
  0x11   : > { %vm287_vm0 = vcmp.ge.s32.totalorder %v286_v5, 0  ;;  %vm288_vm1 = vcmp.lt.s32.totalorder %v286_v5, 16  ;;  %v2836_v9 = vsub.s32 0, %v294_v6  ;;  %v2838_v10 = vsub.s32 1, %v294_v6  ;;  %s2149_s28 = sshll.u32 %s4085_s23, 5  ;;  %s2758_s14 = smov 1  }
  0x12   : > { %vm289_vm2 = vmand %vm287_vm0, %vm288_vm1  ;;  %vm302_vm3 = vcmp.ge.s32.totalorder %v301_v7, 0  ;;  %vm303_vm4 = vcmp.lt.s32.totalorder %v301_v7, 16  ;;  %s267_s7 = scalar_lea.vmem %s3934_s0, %s2149_s28  ;;  %vm317_vm6 = vcmp.ge.s32.totalorder %v316_v8, 0  ;;  %vm318_vm7 = vcmp.lt.s32.totalorder %v316_v8, 16  ;;  %s2759_s15 = smov 94  }
  0x13   : > { %3989 = vst [vmem:[#allocation4_spill] sm:$0xff] %v2836_v9  ;;  %v2128_v11 = vsel %vm289_vm2, 1.0, %v3952_v2  ;;  %vm304_vm5 = vmand %vm302_vm3, %vm303_vm4  ;;  %v377_v12 = vld [vmem:[%s267_s7 + $0x8] sm:$0xff]  ;;  %v379_v13 = vld [vmem:[%s267_s7 + $0x18] sm:$0xff]  ;;  %vm332_vm10 = vcmp.ge.s32.totalorder %v331_v18, 0  ;;  %vm333_vm11 = vcmp.lt.s32.totalorder %v331_v18, 16 }
  0x14   : > { %v2138_v14 = vld [vmem:[%s267_s7 + $0x28] sm:$0xff]  ;;  %1304 = vperm.xlu0 %2305, %v382_v0   ;;  %v296_v15 = vrot.slane %v2128_v11, %v2836_v9  ;;  %v300_v16 = vrot.slane %v2128_v11, %v2838_v10  ;;  %v2129_v17 = vsel %vm304_vm5, 1.0, %v3952_v2  ;;  %v2151_v19 = vpack.c.bf16 %v379_v13, %v377_v12  ;;  %v2140_v20 = vld [vmem:[%s267_s7 + $0x38] sm:$0xff]  ;;  %v376_v21 = vld [vmem:[%s267_s7] sm:$0xff]  ;;  %s2760_s16 = smov 17   ;;  %s2761_s17 = smov 126  }
  0x15   : > { %v378_v22 = vld [vmem:[%s267_s7 + $0x10] sm:$0xff]  ;;  %v311_v23 = vrot.slane %v2129_v17, %v2836_v9  ;;  %v315_v24 = vrot.slane %v2129_v17, %v2838_v10  ;;  %v2207_v25 = vpack.c.bf16 %v2140_v20, %v2138_v14  ;;  %v2137_v27 = vld [vmem:[%s267_s7 + $0x20] sm:$0xff]  ;;  %vm319_vm8 = vmand %vm317_vm6, %vm318_vm7  ;;  %vm347_vm13 = vcmp.ge.s32.totalorder %v346_v34, 0  ;;  %s2762_s18 = smov 98   ;;  %s2763_s19 = smov 30  }
  0x16   : > { %v2153_v26 = vpack.c.bf16 %v378_v22, %v376_v21  ;;  %v2139_v28 = vld [vmem:[%s267_s7 + $0x30] sm:$0xff]  ;;  %v2306_v29 = vpack.i.bf16 %v300_v16, %v296_v15  ;;  %2152 = vmatprep.subr.bf16.mxu0 %v2151_v19  ;;  %v2130_v31 = vsel %vm319_vm8, 1.0, %v3952_v2  ;;  %vm334_vm12 = vmand %vm332_vm10, %vm333_vm11  ;;  %vm348_vm14 = vcmp.lt.s32.totalorder %v346_v34, 16  ;;  %s2764_s20 = smov 2   ;;  %s3941_s22 = smov 77  }
  0x17   : > { %v2209_v30 = vpack.c.bf16 %v2139_v28, %v2137_v27  ;;  %2208 = vmatprep.subr.bf16.mxu1 %v2207_v25  ;;  %v2311_v33 = vpack.i.bf16 %v315_v24, %v311_v23  ;;  %v326_v35 = vrot.slane %v2130_v31, %v2836_v9  ;;  %v330_v36 = vrot.slane %v2130_v31, %v2838_v10  ;;  %vm349_vm15 = vmand %vm347_vm13, %vm348_vm14  ;;  %s2766_s24 = smov 34   ;;  %s2767_s25 = smov 125  }
  0x18   : > { %2154 = vmatpush1.bf16.msra.mxu0 %v2153_v26  ;;  %2307 = vrot.lane.b32.xlu1 %v2306_v29, %s2754_s10  ;;  %v2131_v38 = vsel %vm334_vm12, 1.0, %v3952_v2  ;;  %v2132_v42 = vsel %vm349_vm15, 1.0, %v3952_v2  ;;  %vm362_vm0 = vcmp.ge.s32.totalorder %v361_v39, 0  ;;  %vm363_vm1 = vcmp.lt.s32.totalorder %v361_v39, 16  ;;  %s2768_s26 = smov 83   ;;  %s2769_s27 = smov 45  }
  0x19   : > { %2210 = vmatpush1.bf16.msra.mxu1 %v2209_v30  ;;  %2317 = vrot.lane.b32.xlu0 %v2306_v29, %s2755_s11  ;;  %v2336_v37 = vpack.i.bf16 %v330_v36, %v326_v35  ;;  %v341_v40 = vrot.slane %v2131_v38, %v2836_v9  ;;  %v345_v41 = vrot.slane %v2131_v38, %v2838_v10  ;;  %vm364_vm2 = vmand %vm362_vm0, %vm363_vm1  ;;  %s2770_s28 = smov 3   ;;  %s2771_s29 = smov 51   ;;  %vm283_vm3 = vcmask 416768  }
  0x1a   : > { %v356_v44 = vrot.slane %v2132_v42, %v2836_v9  ;;  %v360_v45 = vrot.slane %v2132_v42, %v2838_v10  ;;  %v2133_v47 = vsel %vm364_vm2, 1.0, %v3952_v2  ;;  %284 = vst.msk [vmem:[#allocation2 + $0x18] sm:$0xff] %vm283_vm3, %v3952_v2  ;;  %vm3958_vm4 = vcmask 908288   ;;  %s2772_s30 = smov 112   ;;  %s2773_s7 = smov 16  }
  0x1b   : > { %2134 = vmatmul.mubr.msk.f32.vlgmr.msra.gmra.mrb[0].mxu0 %vm394_vm9, %v380_v32  ;;  %v2341_v43 = vpack.i.bf16 %v345_v41, %v341_v40  ;;  %v371_v48 = vrot.slane %v2133_v47, %v2836_v9  ;;  %v375_v49 = vrot.slane %v2133_v47, %v2838_v10  ;;  %vm3960_vm5 = vcmask 924672   ;;  %s2774_s8 = smov 96   ;;  %s2775_s9 = smov 32  }
  0x1c   : > { %2141 = vmatmul.mubr.msk.f32.vlgmr.msra.gmra.mrb[0].mxu1 %vm394_vm9, %v380_v32  ;;  %471 = vmatprep.mubr.f32.mxu0 %v3952_v2  ;;  %v2366_v46 = vpack.i.bf16 %v360_v45, %v356_v44  ;;  %vm583_vm6 = vcmask 1039360   ;;  %vm600_vm7 = vcmask 7168   ;;  %vm569_vm8 = vcmask 121856  }
  0x1d   : > { %2312 = vrot.lane.b32.xlu1 %v2311_v33, %s2756_s12  ;;  %1388 = vmatprep.mubr.f32.mxu1 %v3952_v2  ;;  %v2371_v50 = vpack.i.bf16 %v375_v49, %v371_v48  ;;  %vm520_vm10 = vcmask 138240   ;;  %vm724_vm11 = vcmask 769024   ;;  %vm774_vm12 = vcmask 801792  }
  0x1e   : > { %2327 = vrot.lane.b32.xlu0 %v2306_v29, %s2757_s13  ;;  %vm805_vm13 = vcmask 1031168   ;;  %vm3948_vm14 = vcmask 15360   ;;  %vm791_vm15 = vcmask 244736   ;;  %vm3959_vm0 = vcmask 277504  }
  0x1f   : > { %vm3955_vm1 = vcmask 629760   ;;  %vm3957_vm2 = vcmask 1022976  }
  0x21   : > { %2322 = vrot.lane.b32.xlu1 %v2311_v33, %s2758_s14  ;;  %v2910_v0 = vld [vmem:[#allocation2 + $0x18] sm:$0xff] }
  0x22   : > { %2337 = vrot.lane.b32.xlu0 %v2336_v37, %s2759_s15 }
  0x25   : > { %2332 = vrot.lane.b32.xlu1 %v2311_v33, %s2760_s16 }
  0x26   : > { %2347 = vrot.lane.b32.xlu0 %v2336_v37, %s2761_s17 }
  0x29   : > { %2342 = vrot.lane.b32.xlu1 %v2341_v43, %s2762_s18 }
  0x2a   : > { %2357 = vrot.lane.b32.xlu0 %v2336_v37, %s2763_s19 }
  0x2d   : > { %2352 = vrot.lane.b32.xlu1 %v2341_v43, %s2764_s20 }
  0x2e   : > { %2367 = vrot.lane.b32.xlu0 %v2366_v46, %s3941_s22  ;;  %s2776_s22 = smov 48  }
  0x31   : > { %2362 = vrot.lane.b32.xlu1 %v2341_v43, %s2766_s24 }
  0x32   : > { %2377 = vrot.lane.b32.xlu0 %v2366_v46, %s2767_s25 }
  0x35   : > { %2372 = vrot.lane.b32.xlu1 %v2371_v50, %s2768_s26 }
  0x36   : > { %2387 = vrot.lane.b32.xlu0 %v2366_v46, %s2769_s27 }
  0x39   : > { %2382 = vrot.lane.b32.xlu1 %v2371_v50, %s2770_s28 }
  0x3d   : > { %2392 = vrot.lane.b32.xlu1 %v2371_v50, %s2771_s29 }
  0x8a   : > { %v2894_v53 = vpop.permute.xlu1 %2307 }
  0x8b   : > { %v2905_v59 = vunpack.i.h.bf16 %v2894_v53  ;;  %v3951_v60 = vunpack.i.l.bf16 %v2894_v53 }
  0x8d   : > { %v2941_v16 = vsel %vm3958_vm4, %v3951_v60, %v2905_v59 }
  0x8f   : > { %v387_v51 = vpop.permute.xlu0 %386  ;;  %v2898_v55 = vpop.permute.xlu1 %2312 }
  0x90   : > { %v2919_v6 = vunpack.i.h.bf16 %v2898_v55  ;;  %v3947_v7 = vunpack.i.l.bf16 %v2898_v55 }
  0x92   : > { %v2951_v17 = vsel %vm3960_vm5, %v3947_v7, %v2919_v6 }
  0x93   : > { %v1305_v52 = vpop.permute.xlu0 %1304  ;;  %v2902_v57 = vpop.permute.xlu1 %2322 }
  0x94   : > { %v2325_v22 = vunpack.i.h.bf16 %v2902_v57  ;;  %v2967_v23 = vunpack.i.l.bf16 %v2902_v57 }
  0x96   : > { %v2992_v34 = vsel %vm600_vm7, %v2967_v23, %v2325_v22  ;;  %v3012_v41 = vmul.f32 %v2325_v22, %v2910_v0 }
  0x97   : > { %v2896_v54 = vpop.permute.xlu0 %2317  ;;  %v2928_v13 = vpop.permute.xlu1 %2332 }
  0x98   : > { %v2925_v11 = vunpack.i.h.bf16 %v2896_v54  ;;  %v3946_v12 = vunpack.i.l.bf16 %v2896_v54  ;;  %v2335_v26 = vunpack.i.h.bf16 %v2928_v13  ;;  %v2975_v27 = vunpack.i.l.bf16 %v2928_v13 }
  0x9a   : > { %v2957_v18 = vsel %vm583_vm6, %v3946_v12, %v2925_v11  ;;  %v3004_v38 = vsel %vm520_vm10, %v2975_v27, %v2335_v26 }
  0x9b   : > { %v2900_v56 = vpop.permute.xlu0 %2327  ;;  %v2977_v28 = vpop.permute.xlu1 %2342 }
  0x9c   : > { %v2330_v24 = vunpack.i.h.bf16 %v2900_v56  ;;  %v2971_v25 = vunpack.i.l.bf16 %v2900_v56  ;;  %v3007_v39 = vunpack.i.h.bf16 %v2977_v28  ;;  %v3944_v42 = vunpack.i.l.bf16 %v2977_v28 }
  0x9e   : > { %v2996_v35 = vsel %vm569_vm8, %v2971_v25, %v2330_v24  ;;  %v3020_v45 = vmul.f32 %v2330_v24, %v2910_v0 }
  0x9f   : > { %v2912_v1 = vpop.permute.xlu0 %2337  ;;  %v2353_v46 = vpop.permute.xlu1 %2352 }
  0xa0   : > { %v2999_v36 = vunpack.i.h.bf16 %v2912_v1  ;;  %v3945_v37 = vunpack.i.l.bf16 %v2912_v1 }
  0xa3   : > { %v2959_v19 = vpop.permute.xlu0 %2347 }
  0xa4   : > { %v3016_v43 = vunpack.i.h.bf16 %v2959_v19  ;;  %v3943_v44 = vunpack.i.l.bf16 %v2959_v19 }
  0xa6   : > { %v3044_v56 = vsel %vm805_vm13, %v3943_v44, %v3016_v43 }
  0xa7   : > { %v2358_v40 = vpop.permute.xlu0 %2357 }
  0xa8   : > { %v2360_v22 = vunpack.i.h.bf16 %v2358_v40  ;;  %v3061_v24 = vunpack.i.l.bf16 %v2358_v40 }
  0xaa   : > { %v3104_v44 = vmul.f32 %v2360_v22, %v2910_v0 }
  0xee   : > { %v467_v58 = vpop.f32.mrb[0].mxu0 }
  0xef   : > { %v2908_v61 = vadd.f32 %v467_v58, %v387_v51  ;;  %v1384_v62 = vpop.f32.mrb[0].mxu1  ;;  %v469_v63 = vpop.f32.mrb[1].mxu0  ;;  %v3049_v58 = vmul.f32 %v2335_v26, %v2910_v0 }
  0xf0   : > { %v2914_v3 = vadd.f32 %v1384_v62, %v1305_v52  ;;  %v2916_v4 = vadd.f32 %v469_v63, %v387_v51  ;;  %v1386_v5 = vpop.f32.mrb[1].mxu1  ;;  %v3030_v51 = vsel %vm724_vm11, %v3945_v37, %v2999_v36  ;;  %v3051_v62 = vpop.permute.xlu0 %2367 }
  0xf1   : > { %v2922_v8 = vadd.f32 %v1386_v5, %v1305_v52  ;;  %v509_v20 = vmul.f32 %v2941_v16, %v2908_v61  ;;  %v589_v29 = vmul.f32 %v2957_v18, %v2908_v61  ;;  %v558_v32 = vmul.f32 %v2951_v17, %v2908_v61  ;;  %v2363_v26 = vpop.permute.xlu1 %2362 }
  0xf2   : > { %v2932_v14 = vpack.i.bf16 %v2910_v0, %v2916_v4  ;;  %v2396_v15 = vpack.i.bf16 %v2916_v4, %v2908_v61  ;;  %1395 = vst [vmem:[#allocation2 + $0x8] sm:$0xff] %v2914_v3  ;;  %v510_v21 = vmul.f32 %v2905_v59, %v2916_v4  ;;  %v590_v31 = vmul.f32 %v2925_v11, %v2916_v4 }
  0xf3   : > { %1396 = vst [vmem:[#allocation2 + $0x10] sm:$0xff] %v2922_v8  ;;  %v559_v33 = vmul.f32 %v2919_v6, %v2916_v4  ;;  %v652_v49 = vmul.f32 %v2996_v35, %v2916_v4  ;;  %v623_v50 = vmul.f32 %v2992_v34, %v2916_v4  ;;  %v3038_v52 = vsel %vm774_vm12, %v3944_v42, %v3007_v39 }
  0xf4   : > { %2402 = vrot.lane.b32.xlu0 %v2932_v14, %s2772_s30  ;;  %2397 = vrot.lane.b32.xlu1 %v2396_v15, %s2773_s7  ;;  %v2421_v30 = vpack.i.bf16 %v510_v21, %v509_v20  ;;  %v2431_v47 = vpack.i.bf16 %v590_v31, %v589_v29  ;;  %v700_v57 = vmul.f32 %v3004_v38, %v2916_v4  ;;  %v2355_v20 = vunpack.i.h.bf16 %v2353_v46 }
  0xf5   : > { %v2426_v48 = vpack.i.bf16 %v559_v33, %v558_v32  ;;  %v2441_v63 = vpack.i.bf16 %v3020_v45, %v652_v49  ;;  %v2436_v5 = vpack.i.bf16 %v3012_v41, %v623_v50  ;;  %v730_v13 = vmul.f32 %v3030_v51, %v2908_v61  ;;  %v3106_v42 = vpop.permute.xlu1 %2372 }
  0xf6   : > { %v3059_v21 = vunpack.i.l.bf16 %v2353_v46  ;;  %v2365_v29 = vunpack.i.h.bf16 %v2363_v26  ;;  %v2446_v31 = vpack.i.bf16 %v3049_v58, %v700_v57  ;;  %v811_v32 = vmul.f32 %v3044_v56, %v2908_v61 }
  0xf7   : > { %v812_v40 = vmul.f32 %v3016_v43, %v2916_v4  ;;  %v780_v46 = vmul.f32 %v3038_v52, %v2908_v61  ;;  %v3082_v49 = vsel %vm791_vm15, %v3061_v24, %v2360_v22  ;;  %v3085_v50 = vunpack.i.h.bf16 %v3051_v62 }
  0xf8   : > { %2412 = vrot.lane.b32.xlu0 %v2932_v14, %s2774_s8  ;;  %2407 = vrot.lane.b32.xlu1 %v2396_v15, %s2775_s9  ;;  %v3949_v57 = vunpack.i.l.bf16 %v3051_v62  ;;  %v3119_v7 = vunpack.i.h.bf16 %v3106_v42  ;;  %v3954_v22 = vunpack.i.l.bf16 %v3106_v42 }
  0xfa   : > { %v3116_v12 = vsel %vm3955_vm1, %v3949_v57, %v3085_v50  ;;  %vm1012_vm1 = vcmask 367616  }
  0xfc   : > { %2417 = vrot.lane.b32.xlu1 %v2396_v15, %s2776_s22  ;;  %2422 = vrot.lane.b32.xlu0 %v2421_v30, %s2760_s16  ;;  %v731_v15 = vmul.f32 %v2999_v36, %v2916_v4  ;;  %v3065_v30 = vunpack.i.l.bf16 %v2363_v26 }
  0xfe   : > { %v2451_v33 = vpack.i.bf16 %v731_v15, %v730_v13  ;;  %v3097_v13 = vsel %vm3959_vm0, %v3065_v30, %v2365_v29 }
 0x100   : > { %2432 = vrot.lane.b32.xlu1 %v2431_v47, %s2758_s14  ;;  %2427 = vrot.lane.b32.xlu0 %v2426_v48, %s2757_s13  ;;  %v781_v47 = vmul.f32 %v3007_v39, %v2916_v4  ;;  %v3078_v48 = vsel %vm3948_vm14, %v3059_v21, %v2355_v20  ;;  %vm3956_vm14 = vcmask 678912  }
 0x102   : > { %v2456_v37 = vpack.i.bf16 %v781_v47, %v780_v46  ;;  %v3133_v46 = vmul.f32 %v2365_v29, %v2910_v0 }
 0x104   : > { %2442 = vrot.lane.b32.xlu1 %v2441_v63, %s2756_s12  ;;  %2437 = vrot.lane.b32.xlu0 %v2436_v5, %s2755_s11  ;;  %v3088_v63 = vpop.permute.xlu0 %2377  ;;  %v3093_v5 = vmul.f32 %v2355_v20, %v2910_v0  ;;  %v874_v20 = vmul.f32 %v3082_v49, %v2916_v4 }
 0x105   : > { %v3100_v15 = vunpack.i.h.bf16 %v3088_v63  ;;  %v3950_v26 = vunpack.i.l.bf16 %v3088_v63 }
 0x106   : > { %v2471_v47 = vpack.i.bf16 %v3104_v44, %v874_v20 }
 0x107   : > { %v1033_v60 = vmul.f32 %v3100_v15, %v2916_v4 }
 0x108   : > { %2447 = vrot.lane.b32.xlu1 %v2446_v31, %s2754_s10  ;;  %2452 = vrot.lane.b32.xlu0 %v2451_v33, %s2766_s24  ;;  %v2461_v31 = vpack.i.bf16 %v812_v40, %v811_v32  ;;  %v845_v33 = vmul.f32 %v3078_v48, %v2916_v4  ;;  %v3128_v32 = vsel %vm3957_vm2, %v3950_v26, %v3100_v15  ;;  %vm3961_vm2 = vcmask 916480  }
 0x109   : > { %v922_v40 = vmul.f32 %v3097_v13, %v2916_v4  ;;  %v3145_v26 = vsel %vm3956_vm14, %v3954_v22, %v3119_v7  ;;  %v1032_v20 = vmul.f32 %v3128_v32, %v2908_v61  ;;  %v1002_v22 = vmul.f32 %v3119_v7, %v2916_v4 }
 0x10a   : > { %v2466_v57 = vpack.i.bf16 %v3093_v5, %v845_v33  ;;  %v1001_v2 = vmul.f32 %v3145_v26, %v2908_v61  ;;  %vm1043_vm14 = vcmask 23552  }
 0x10b   : > { %v2476_v29 = vpack.i.bf16 %v3133_v46, %v922_v40  ;;  %v3990_v40 = vmov 0.0  }
 0x10c   : > { %2462 = vrot.lane.b32.xlu1 %v2461_v31, %s2764_s20  ;;  %2457 = vrot.lane.b32.xlu0 %v2456_v37, %s2763_s19  ;;  %v952_v31 = vmul.f32 %v3116_v12, %v2908_v61  ;;  %v953_v37 = vmul.f32 %v3085_v50, %v2916_v4 }
 0x10e   : > { %v2481_v33 = vpack.i.bf16 %v953_v37, %v952_v31  ;;  %v2496_v31 = vpack.i.bf16 %v2914_v3, %v3990_v40  ;;  %v3166_v37 = vpack.i.bf16 %v2914_v3, %v2910_v0 }
 0x110   : > { %2472 = vrot.lane.b32.xlu1 %v2471_v47, %s2762_s18  ;;  %2467 = vrot.lane.b32.xlu0 %v2466_v57, %s2761_s17  ;;  %v2491_v57 = vpack.i.bf16 %v1033_v60, %v1032_v20  ;;  %v2486_v47 = vpack.i.bf16 %v1002_v22, %v1001_v2  ;;  %v3176_v2 = vpack.i.bf16 %v2922_v8, %v2908_v61  ;;  %v3991_v22 = vunpack.i.l.bf16 %v2894_v53 }
 0x111   : > { %v2521_v60 = vpack.i.bf16 %v3990_v40, %v2922_v8  ;;  %v1418_v20 = vmul.f32 %v2914_v3, %v2941_v16  ;;  %v1457_v40 = vmul.f32 %v2914_v3, %v2951_v17  ;;  %v3993_v16 = vunpack.i.l.bf16 %v2896_v54 }
 0x112   : > { %v3994_v17 = vunpack.i.l.bf16 %v2912_v1 }
 0x114   : > { %2477 = vrot.lane.b32.xlu1 %v2476_v29, %s2759_s15  ;;  %2482 = vrot.lane.b32.xlu0 %v2481_v33, %s2771_s29  ;;  %v3185_v29 = vmul.f32 0.0, %v3991_v22  ;;  %v1478_v22 = vmul.f32 %v2914_v3, %v2957_v18  ;;  %v1584_v18 = vmul.f32 %v2914_v3, %v3030_v51  ;;  %v3996_v51 = vunpack.i.l.bf16 %v2959_v19 }
 0x116   : > { %v2546_v33 = vpack.i.bf16 %v1418_v20, %v3185_v29  ;;  %v3214_v20 = vmul.f32 0.0, %v3994_v17  ;;  %v1644_v17 = vmul.f32 %v2914_v3, %v3044_v56  ;;  %v3997_v56 = vunpack.i.l.bf16 %v3088_v63 }
 0x117   : > { %v3999_v63 = vunpack.i.l.bf16 %v3106_v42 }
 0x118   : > { %2492 = vrot.lane.b32.xlu1 %v2491_v57, %s2770_s28  ;;  %2487 = vrot.lane.b32.xlu0 %v2486_v47, %s2769_s27  ;;  %v3992_v57 = vunpack.i.l.bf16 %v2898_v55  ;;  %v1502_v55 = vmul.f32 %v2967_v23, %v2914_v3 }
 0x11a   : > { %v3195_v47 = vmul.f32 0.0, %v3992_v57  ;;  %v2561_v54 = vpack.i.bf16 %v1502_v55, %v3012_v41  ;;  %v1523_v57 = vmul.f32 %v2971_v25, %v2914_v3  ;;  %v1562_v41 = vmul.f32 %v2975_v27, %v2914_v3 }
 0x11b   : > { %v1689_v55 = vmul.f32 %v3061_v24, %v2914_v3 }
 0x11c   : > { %2497 = vrot.lane.b32.xlu1 %v2496_v31, %s2773_s7  ;;  %2502 = vrot.lane.b32.xlu0 %v3166_v37, %s2772_s30  ;;  %v2551_v53 = vpack.i.bf16 %v1457_v40, %v3195_v47  ;;  %v2566_v1 = vpack.i.bf16 %v1523_v57, %v3020_v45 }
 0x120   : > { %2507 = vrot.lane.b32.xlu1 %v2496_v31, %s2775_s9  ;;  %2512 = vrot.lane.b32.xlu0 %v3166_v37, %s2774_s8 }
 0x124   : > { %2517 = vrot.lane.b32.xlu1 %v2496_v31, %s2776_s22  ;;  %2527 = vrot.lane.b32.xlu0 %v3176_v2, %s2772_s30  ;;  %v3204_v31 = vmul.f32 0.0, %v3993_v16  ;;  %v1623_v16 = vmul.f32 %v2914_v3, %v3038_v52  ;;  %v2596_v52 = vpack.i.bf16 %v1689_v55, %v3104_v44  ;;  %v3998_v44 = vunpack.i.l.bf16 %v3051_v62  ;;  %v2383_v55 = vpop.permute.xlu1 %2382 }
 0x128   : > { %2522 = vrot.lane.b32.xlu1 %v2521_v60, %s2773_s7  ;;  %2537 = vrot.lane.b32.xlu0 %v3176_v2, %s2774_s8 }
 0x12c   : > { %2532 = vrot.lane.b32.xlu1 %v2521_v60, %s2775_s9  ;;  %2547 = vrot.lane.b32.xlu0 %v2546_v33, %s2760_s16  ;;  %v2556_v33 = vpack.i.bf16 %v1478_v22, %v3204_v31  ;;  %v3238_v22 = vmul.f32 0.0, %v3996_v51  ;;  %v1750_v51 = vmul.f32 %v2914_v3, %v3116_v12 }
 0x12e   : > { %v2586_v19 = vpack.i.bf16 %v1644_v17, %v3238_v22 }
 0x130   : > { %2542 = vrot.lane.b32.xlu1 %v2521_v60, %s2776_s22  ;;  %2552 = vrot.lane.b32.xlu0 %v2551_v53, %s2757_s13  ;;  %v3995_v60 = vunpack.i.l.bf16 %v2977_v28  ;;  %v2571_v53 = vpack.i.bf16 %v1584_v18, %v3214_v20  ;;  %v2576_v28 = vpack.i.bf16 %v1562_v41, %v3049_v58  ;;  %v1728_v58 = vmul.f32 %v3065_v30, %v2914_v3 }
 0x132   : > { %v3226_v40 = vmul.f32 0.0, %v3995_v60  ;;  %v3260_v60 = vmul.f32 0.0, %v3997_v56 }
 0x134   : > { %2557 = vrot.lane.b32.xlu1 %v2556_v33, %s2758_s14  ;;  %2562 = vrot.lane.b32.xlu0 %v2561_v54, %s2755_s11  ;;  %v2581_v45 = vpack.i.bf16 %v1623_v16, %v3226_v40  ;;  %v2388_v33 = vpop.permute.xlu0 %2387  ;;  %v1668_v54 = vmul.f32 %v3059_v21, %v2914_v3  ;;  %v1810_v16 = vmul.f32 %v2914_v3, %v3128_v32 }
 0x135   : > { %v2390_v57 = vunpack.i.h.bf16 %v2388_v33  ;;  %v3254_v18 = vunpack.i.l.bf16 %v2388_v33  ;;  %v1479_v33 = vmul.f32 %v2925_v11, %v2922_v8  ;;  %v1503_v11 = vmul.f32 %v2922_v8, %v2992_v34 }
 0x136   : > { %v2591_v41 = vpack.i.bf16 %v1668_v54, %v3093_v5  ;;  %v2616_v5 = vpack.i.bf16 %v1810_v16, %v3260_v60 }
 0x137   : > { %v1096_v62 = vmul.f32 %v2390_v57, %v2910_v0  ;;  %v2646_v54 = vpack.i.bf16 %v3204_v31, %v1479_v33 }
 0x138   : > { %2567 = vrot.lane.b32.xlu1 %v2566_v1, %s2756_s12  ;;  %2572 = vrot.lane.b32.xlu0 %v2571_v53, %s2766_s24  ;;  %v3264_v1 = vmul.f32 0.0, %v3998_v44  ;;  %v2601_v53 = vpack.i.bf16 %v1728_v58, %v3133_v46  ;;  %v3281_v46 = vmul.f32 0.0, %v3999_v63  ;;  %v3296_v58 = vunpack.i.l.bf16 %v2383_v55 }
 0x139   : > { %v1645_v63 = vmul.f32 %v3016_v43, %v2922_v8  ;;  %v1690_v43 = vmul.f32 %v2922_v8, %v3082_v49  ;;  %v1729_v49 = vmul.f32 %v2922_v8, %v3097_v13 }
 0x13a   : > { %v2606_v32 = vpack.i.bf16 %v1750_v51, %v3264_v1 }
 0x13c   : > { %2577 = vrot.lane.b32.xlu1 %v2576_v28, %s2754_s10  ;;  %2582 = vrot.lane.b32.xlu0 %v2581_v45, %s2763_s19  ;;  %v3274_v28 = vsel %vm1012_vm1, %v3254_v18, %v2390_v57  ;;  %v1789_v45 = vmul.f32 %v2914_v3, %v3145_v26  ;;  %v622_v26 = vmul.f32 %v2967_v23, %v2908_v61 }
 0x13d   : > { %v1095_v12 = vmul.f32 %v3274_v28, %v2916_v4  ;;  %v651_v23 = vmul.f32 %v2971_v25, %v2908_v61  ;;  %v699_v25 = vmul.f32 %v2975_v27, %v2908_v61  ;;  %v2681_v27 = vpack.i.bf16 %v3238_v22, %v1645_v63 }
 0x13e   : > { %v2611_v42 = vpack.i.bf16 %v1789_v45, %v3281_v46  ;;  %v2651_v31 = vpack.i.bf16 %v1503_v11, %v622_v26  ;;  %v3350_v45 = vpop.permute.xlu1 %2392  ;;  %v1811_v11 = vmul.f32 %v3100_v15, %v2922_v8 }
 0x13f   : > { %v2641_v17 = vpack.i.bf16 %v1096_v62, %v1095_v12  ;;  %v1624_v12 = vmul.f32 %v3007_v39, %v2922_v8  ;;  %v3369_v33 = vunpack.i.l.bf16 %v3350_v45 }
 0x140   : > { %2597 = vrot.lane.b32.xlu1 %v2596_v52, %s2762_s18  ;;  %2587 = vrot.lane.b32.xlu0 %v2586_v19, %s2764_s20  ;;  %v1419_v52 = vmul.f32 %v2905_v59, %v2922_v8  ;;  %v2385_v19 = vunpack.i.h.bf16 %v2383_v55  ;;  %v1458_v59 = vmul.f32 %v2919_v6, %v2922_v8 }
 0x142   : > { %v2621_v57 = vpack.i.bf16 %v3185_v29, %v1419_v52  ;;  %v3310_v56 = vsel %vm1043_vm14, %v3296_v58, %v2385_v19  ;;  %v1524_v29 = vmul.f32 %v2922_v8, %v2996_v35  ;;  %v2626_v34 = vpack.i.bf16 %v3195_v47, %v1458_v59 }
 0x143   : > { %v1066_v6 = vmul.f32 %v3310_v56, %v2916_v4  ;;  %v1067_v44 = vmul.f32 %v2385_v19, %v2910_v0  ;;  %v1563_v35 = vmul.f32 %v2922_v8, %v3004_v38  ;;  %v1834_v47 = vmul.f32 %v3296_v58, %v2914_v3 }
 0x144   : > { %2602 = vrot.lane.b32.xlu1 %v2601_v53, %s2759_s15  ;;  %2592 = vrot.lane.b32.xlu0 %v2591_v41, %s2761_s17  ;;  %v2656_v53 = vpack.i.bf16 %v1524_v29, %v651_v23  ;;  %v1751_v59 = vmul.f32 %v3085_v50, %v2922_v8  ;;  %v1065_v50 = vmul.f32 %v3296_v58, %v2908_v61  ;;  %v381_v58 = vld [vmem:[%s3936_s2 + $0x8] sm:$0xff] }
 0x145   : > { %v2631_v41 = vpack.i.bf16 %v1067_v44, %v1066_v6  ;;  %v2661_v16 = vpack.i.bf16 %v1563_v35, %v699_v25  ;;  %v2636_v51 = vpack.i.bf16 %v1834_v47, %v1067_v44  ;;  %v1790_v25 = vmul.f32 %v3119_v7, %v2922_v8  ;;  %2135 = vmatmul.mubr.msk.f32.gmra.mrb[2].mxu0 %vm394_vm9, %v381_v58 }
 0x146   : > { %2142 = vmatmul.mubr.msk.f32.gmra.mrb[2].mxu1 %vm394_vm9, %v381_v58 }
 0x147   : > { %v2716_v47 = vpack.i.bf16 %v3281_v46, %v1790_v25 }
 0x148   : > { %2617 = vrot.lane.b32.xlu1 %v2616_v5, %s2770_s28  ;;  %2607 = vrot.lane.b32.xlu0 %v2606_v32, %s2771_s29  ;;  %v1585_v5 = vmul.f32 %v2999_v36, %v2922_v8  ;;  %v1855_v32 = vmul.f32 %v3254_v18, %v2914_v3  ;;  %v873_v36 = vmul.f32 %v3061_v24, %v2908_v61 }
 0x149   : > { %v921_v24 = vmul.f32 %v3065_v30, %v2908_v61 }
 0x14a   : > { %v2666_v38 = vpack.i.bf16 %v3214_v20, %v1585_v5  ;;  %v2696_v22 = vpack.i.bf16 %v1855_v32, %v1096_v62  ;;  %v2671_v20 = vpack.i.bf16 %v3226_v40, %v1624_v12  ;;  %v2701_v39 = vpack.i.bf16 %v1690_v43, %v873_v36 }
 0x14b   : > { %v844_v62 = vmul.f32 %v3059_v21, %v2908_v61  ;;  %v1669_v40 = vmul.f32 %v2922_v8, %v3078_v48  ;;  %v2706_v52 = vpack.i.bf16 %v1729_v49, %v921_v24 }
 0x14c   : > { %2642 = vrot.lane.b32.xlu1 %v2641_v17, %s2768_s26  ;;  %2612 = vrot.lane.b32.xlu0 %v2611_v42, %s2769_s27  ;;  %v2395_v42 = vunpack.i.h.bf16 %v3350_v45 }
 0x14d   : > { %v2686_v21 = vpack.i.bf16 %v1669_v40, %v844_v62  ;;  %v1142_v40 = vmul.f32 %v3369_v33, %v2908_v61 }
 0x14e   : > { %v3382_v48 = vsel %vm283_vm3, %v3369_v33, %v2395_v42 }
 0x150   : > { %2647 = vrot.lane.b32.xlu1 %v2646_v54, %s2758_s14  ;;  %2622 = vrot.lane.b32.xlu0 %v2621_v57, %s2760_s16  ;;  %v1143_v57 = vmul.f32 %v3382_v48, %v2916_v4  ;;  %s2124_s14 = sshll.u32 %s4085_s23, 1 }
 0x154   : > { %2652 = vrot.lane.b32.xlu1 %v2651_v31, %s2755_s11  ;;  %2627 = vrot.lane.b32.xlu0 %v2626_v34, %s2757_s13  ;;  %s4000_s11 = smov 77   ;;  %v1835_v34 = vmul.f32 %v2922_v8, %v3310_v56 }
 0x156   : > { %v2731_v7 = vpack.i.bf16 %v1835_v34, %v1065_v50  ;;  %v1895_v34 = vmul.f32 %v2922_v8, %v3382_v48 }
 0x158   : > { %2657 = vrot.lane.b32.xlu1 %v2656_v53, %s2756_s12  ;;  %2632 = vrot.lane.b32.xlu0 %v2631_v41, %s2767_s25  ;;  %v2711_v53 = vpack.i.bf16 %v3264_v1, %v1751_v59  ;;  %v481_v59 = vld [vmem:[%s3938_s4 + $0x8] sm:$0xff] }
 0x15c   : > { %2662 = vrot.lane.b32.xlu1 %v2661_v16, %s2754_s10  ;;  %2637 = vrot.lane.b32.xlu0 %v2636_v51, %s2767_s25  ;;  %s2777_s10 = smov 80   ;;  %v1094_v16 = vmul.f32 %v3254_v18, %v2908_v61  ;;  %v1856_v51 = vmul.f32 %v2922_v8, %v3274_v28 }
 0x160   : > { %2682 = vrot.lane.b32.xlu1 %v2681_v27, %s2764_s20  ;;  %2667 = vrot.lane.b32.xlu0 %v2666_v38, %s2766_s24  ;;  %v2736_v38 = vpack.i.bf16 %v1856_v51, %v1094_v16 }
 0x164   : > { %2697 = vrot.lane.b32.xlu1 %v2696_v22, %s2768_s26  ;;  %2672 = vrot.lane.b32.xlu0 %v2671_v20, %s2763_s19 }
 0x166   : > { %v3355_v55 = vpop.permute.xlu0 %2402  ;;  %v3357_v17 = vpop.permute.xlu1 %2397 }
 0x167   : > { %v2400_v19 = vunpack.i.h.bf16 %v3357_v17  ;;  %v2405_v56 = vunpack.i.h.bf16 %v3355_v55  ;;  %v3968_v35 = vunpack.i.l.bf16 %v3355_v55 }
 0x168   : > { %2702 = vrot.lane.b32.xlu1 %v2701_v39, %s2762_s18  ;;  %2677 = vrot.lane.b32.xlu0 %v2932_v14, %s2777_s10  ;;  %v2399_v14 = vunpack.i.l.bf16 %v3357_v17 }
 0x169   : > { %v3451_v18 = vsel %vm3961_vm2, %v3968_v35, %v2405_v56  ;;  %vm903_vm2 = vcmask 785408  }
 0x16a   : > { %v3374_v30 = vpop.permute.xlu0 %2412  ;;  %v3376_v13 = vpop.permute.xlu1 %2407  ;;  %v540_v15 = vsel %vm394_vm9, %v2399_v14, %v2400_v19 }
 0x16b   : > { %v2410_v20 = vunpack.i.h.bf16 %v3376_v13  ;;  %v2409_v39 = vunpack.i.l.bf16 %v3376_v13  ;;  %v2415_v56 = vunpack.i.h.bf16 %v3374_v30 }
 0x16c   : > { %2707 = vrot.lane.b32.xlu1 %v2706_v52, %s2759_s15  ;;  %2687 = vrot.lane.b32.xlu0 %v2686_v21, %s2761_s17  ;;  %s273_s17 = scalar_lea.vmem %s3935_s1, %s2124_s14  ;;  %v1144_v52 = vmul.f32 %v2395_v42, %v2910_v0 }
 0x16d   : > { %v3493_v19 = vld [vmem:[%s273_s17] sm:$0x3] }
 0x16e   : > { %v3388_v26 = vpop.permute.xlu1 %2417  ;;  %v3390_v54 = vpop.permute.xlu0 %2422  ;;  %4001 = vst [vmem:[#allocation5_spill] sm:$0xff] %v3493_v19  ;;  %v491_v0 = vrot.slane %v3493_v19, %v2838_v10 }
 0x16f   : > { %v2425_v23 = vunpack.i.h.bf16 %v3390_v54  ;;  %v2424_v29 = vunpack.i.l.bf16 %v3390_v54  ;;  %v2420_v48 = vunpack.i.h.bf16 %v3388_v26 }
 0x170   : > { %1150 = vrot.lane.b32.xlu1 %v1143_v57, %s4000_s11  ;;  %2692 = vrot.lane.b32.xlu0 %v3176_v2, %s2777_s10  ;;  %v2726_v2 = vpack.i.bf16 %v3260_v60, %v1811_v11 }
 0x171   : > { %v522_v31 = vsel %vm520_vm10, %v2424_v29, %v2425_v23  ;;  %v3500_v23 = vld [vmem:[%s273_s17 + $0x2] sm:$0x3] }
 0x172   : > { %v3413_v6 = vpop.permute.xlu1 %2432  ;;  %v3415_v44 = vpop.permute.xlu0 %2427  ;;  %v2155_v41 = vpack.c.bf16 %v540_v15, %v522_v31  ;;  %4002 = vst [vmem:[#allocation6_spill] sm:$0xff] %v3500_v23  ;;  %v1409_v31 = vrot.slane %v3500_v23, %v2838_v10 }
 0x173   : > { %v2435_v21 = vunpack.i.h.bf16 %v3413_v6  ;;  %v2434_v13 = vunpack.i.l.bf16 %v3413_v6 }
 0x174   : > { %2727 = vrot.lane.b32.xlu1 %v2726_v2, %s2770_s28  ;;  %2712 = vrot.lane.b32.xlu0 %v2711_v53, %s2771_s29  ;;  %v495_v53 = vmul.f32 %v491_v0, %v481_v59  ;;  %v1413_v8 = vmul.f32 %v1409_v31, %v481_v59 }
 0x175   : > { %2156 = vmatprep.subr.bf16.mxu0 %v2155_v41 }
 0x176   : > { %v3429_v60 = vpop.permute.xlu1 %2442  ;;  %v3431_v1 = vpop.permute.xlu0 %2437 }
 0x177   : > { %v2445_v63 = vunpack.i.h.bf16 %v3429_v60  ;;  %v3967_v5 = vunpack.i.l.bf16 %v3429_v60 }
 0x178   : > { %2732 = vrot.lane.b32.xlu1 %v2731_v7, %s2767_s25  ;;  %2717 = vrot.lane.b32.xlu0 %v2716_v47, %s2769_s27  ;;  %v2414_v7 = vunpack.i.l.bf16 %v3374_v30  ;;  %v2419_v47 = vunpack.i.l.bf16 %v3388_v26 }
 0x179   : > { %v3446_v46 = vsel %vm3960_vm5, %v3967_v5, %v2445_v63  ;;  %vm981_vm5 = vcmask 392192  }
 0x17a   : > { %v3453_v28 = vpop.permute.xlu1 %2447  ;;  %v3455_v27 = vpop.permute.xlu0 %2452  ;;  %v3578_v59 = vsel %vm981_vm5, %v2419_v47, %v2420_v48 }
 0x17b   : > { %v2450_v12 = vunpack.i.h.bf16 %v3453_v28  ;;  %v3965_v36 = vunpack.i.l.bf16 %v3453_v28  ;;  %v2455_v43 = vunpack.i.h.bf16 %v3455_v27  ;;  %v3966_v22 = vunpack.i.l.bf16 %v3455_v27  ;;  %4004 = vst [vmem:[#allocation8_spill] sm:$0xff] %v3578_v59 }
 0x17c   : > { %2737 = vrot.lane.b32.xlu1 %v2736_v38, %s2768_s26  ;;  %2722 = vrot.lane.b32.xlu0 %v3166_v37, %s2777_s10  ;;  %v1894_v38 = vmul.f32 %v3369_v33, %v2914_v3  ;;  %v3565_v3 = vsel %vm903_vm2, %v2414_v7, %v2415_v56  ;;  %s2150_s26 = sshll.u32 %s4085_s23, 4 }
 0x17d   : > { %v3472_v24 = vsel %vm3958_vm4, %v3965_v36, %v2450_v12  ;;  %v3477_v49 = vsel %vm3959_vm0, %v3966_v22, %v2455_v43  ;;  %vm760_vm4 = vcmask 261120   ;;  %vm1214_vm0 = vcmask 719872   ;;  %s280_s29 = scalar_lea.vmem %s3940_s6, %s2150_s26 }
 0x17e   : > { %v3482_v37 = vpop.permute.xlu1 %2462  ;;  %v3484_v62 = vpop.permute.xlu0 %2457  ;;  %v3509_v45 = vsel %vm760_vm4, %v2409_v39, %v2410_v20  ;;  %2136 = vmatprep.mubr.msk.f32.mxu0 %vm1214_vm0, %v495_v53  ;;  %2144 = vmatprep.mubr.msk.f32.mxu1 %vm1214_vm0, %v1413_v8 }
 0x17f   : > { %v2460_v57 = vunpack.i.h.bf16 %v3484_v62  ;;  %v3972_v11 = vunpack.i.l.bf16 %v3484_v62 }
 0x180   : > { %1148 = vrot.lane.b32.xlu1 %v1142_v40, %s4000_s11  ;;  %1152 = vrot.lane.b32.xlu0 %v1144_v52, %s4000_s11 }
 0x181   : > { %v3514_v42 = vsel %vm791_vm15, %v3972_v11, %v2460_v57 }
 0x182   : > { %v3518_v15 = vpop.permute.xlu1 %2472  ;;  %v3520_v50 = vpop.permute.xlu0 %2467 }
 0x183   : > { %v2475_v41 = vunpack.i.h.bf16 %v3518_v15  ;;  %v3964_v25 = vunpack.i.l.bf16 %v3518_v15  ;;  %v2470_v58 = vunpack.i.h.bf16 %v3520_v50  ;;  %v3962_v10 = vunpack.i.l.bf16 %v3520_v50 }
 0x184   : > { %1904 = vrot.lane.b32.xlu1 %v1144_v52, %s4000_s11  ;;  %1902 = vrot.lane.b32.xlu0 %v1895_v34, %s4000_s11  ;;  %v1301_v52 = vld [vmem:[%s3937_s3 + $0x8] sm:$0xff] }
 0x185   : > { %v3539_v16 = vsel %vm805_vm13, %v3962_v10, %v2470_v58  ;;  %v3544_v51 = vsel %vm774_vm12, %v3964_v25, %v2475_v41 }
 0x186   : > { %v3547_v30 = vpop.permute.xlu1 %2477  ;;  %v3549_v63 = vpop.permute.xlu0 %2482 }
 0x187   : > { %v2480_v12 = vunpack.i.h.bf16 %v3547_v30  ;;  %v3963_v43 = vunpack.i.l.bf16 %v3547_v30  ;;  %v2485_v20 = vunpack.i.h.bf16 %v3549_v63  ;;  %v3971_v40 = vunpack.i.l.bf16 %v3549_v63 }
 0x188   : > { %1900 = vrot.lane.b32.xlu0 %v1894_v38, %s4000_s11  ;;  %391 = vperm.xlu1 %2741, %v1301_v52  }
 0x189   : > { %v3570_v33 = vsel %vm724_vm11, %v3963_v43, %v2480_v12  ;;  %v3575_v57 = vsel %vm283_vm3, %v3971_v40, %v2485_v20 }
 0x18a   : > { %4003 = vst [vmem:[#allocation7_spill] sm:$0xff] %v3575_v57  ;;  %v3580_v0 = vpop.permute.xlu1 %2492  ;;  %v3582_v31 = vpop.permute.xlu0 %2487 }
 0x18b   : > { %v2495_v41 = vunpack.i.h.bf16 %v3580_v0  ;;  %v3970_v58 = vunpack.i.l.bf16 %v3580_v0  ;;  %v2490_v56 = vunpack.i.h.bf16 %v3582_v31  ;;  %v3969_v8 = vunpack.i.l.bf16 %v3582_v31 }
 0x18c   : > { %1309 = vperm.xlu0 %2305, %v1301_v52  }
 0x18d   : > { %v3595_v48 = vsel %vm1012_vm1, %v3969_v8, %v2490_v56  ;;  %v3600_v38 = vsel %vm1043_vm14, %v3970_v58, %v2495_v41 }
 0x18e   : > { %4005 = vst [vmem:[#allocation9_spill] sm:$0xff] %v3595_v48  ;;  %4006 = vst [vmem:[#allocation10_spill] sm:$0xff] %v3600_v38  ;;  %v3602_v12 = vpop.permute.xlu1 %2497  ;;  %v3604_v20 = vpop.permute.xlu0 %2502 }
 0x18f   : > { %v2499_v35 = vunpack.i.l.bf16 %v3602_v12 }
 0x192   : > { %v3608_v34 = vpop.permute.xlu1 %2507  ;;  %v2513_v52 = vpop.permute.xlu0 %2512 }
 0x193   : > { %v2509_v10 = vunpack.i.l.bf16 %v3608_v34  ;;  %v2515_v36 = vunpack.i.h.bf16 %v2513_v52  ;;  %v2514_v5 = vunpack.i.l.bf16 %v2513_v52  ;;  %v602_v52 = vsel %vm600_vm7, %v2434_v13, %v2435_v21 }
 0x194   : > { %v3975_v21 = vunpack.i.l.bf16 %v3431_v1 }
 0x195   : > { %v3614_v56 = vsel %vm760_vm4, %v2509_v10, %v2409_v39  ;;  %v2430_v39 = vunpack.i.h.bf16 %v3415_v44  ;;  %v2429_v10 = vunpack.i.l.bf16 %v3415_v44 }
 0x196   : > { %v2518_v43 = vpop.permute.xlu1 %2517  ;;  %v3616_v41 = vpop.permute.xlu0 %2527 }
 0x197   : > { %v2519_v25 = vunpack.i.l.bf16 %v2518_v43  ;;  %v571_v44 = vsel %vm569_vm8, %v2429_v10, %v2430_v39  ;;  %v2440_v39 = vunpack.i.h.bf16 %v3431_v1 }
 0x198   : > { %v2159_v19 = vpack.c.bf16 %v602_v52, %v571_v44 }
 0x199   : > { %v3619_v26 = vsel %vm981_vm5, %v2519_v25, %v2419_v47 }
 0x19a   : > { %4007 = vst [vmem:[#allocation11_spill] sm:$0xff] %v3619_v26  ;;  %v3621_v2 = vpop.permute.xlu1 %2522  ;;  %v2538_v53 = vpop.permute.xlu0 %2537 }
 0x19b   : > { %v2540_v22 = vunpack.i.h.bf16 %v2538_v53  ;;  %v2539_v32 = vunpack.i.l.bf16 %v2538_v53  ;;  %v2525_v48 = vunpack.i.h.bf16 %v3621_v2  ;;  %v2524_v38 = vunpack.i.l.bf16 %v3621_v2 }
 0x19d   : > { %v3629_v25 = vsel %vm903_vm2, %v2539_v32, %v2414_v7  ;;  %v3632_v47 = vsel %vm903_vm2, %v2515_v36, %v2540_v22  ;;  %v3639_v53 = vsel %vm903_vm2, %v2540_v22, %v2514_v5  ;;  %v539_v32 = vsel %vm394_vm9, %v2499_v35, %v2399_v14 }
 0x19e   : > { %4008 = vst [vmem:[#allocation12_spill] sm:$0xff] %v3632_v47  ;;  %v3634_v8 = vpop.permute.xlu1 %2532  ;;  %v3636_v58 = vpop.permute.xlu0 %2547  ;;  %v2520_v5 = vunpack.i.h.bf16 %v2518_v43  ;;  %vm4033_vm2 = vcmask 277504  }
 0x19f   : > { %v2549_v6 = vunpack.i.l.bf16 %v3636_v58 }
 0x1a1   : > { %v521_v36 = vsel %vm520_vm10, %v2549_v6, %v2424_v29 }
 0x1a2   : > { %v2157_v7 = vpack.c.bf16 %v539_v32, %v521_v36  ;;  %v2543_v40 = vpop.permute.xlu1 %2542  ;;  %v3650_v11 = vpop.permute.xlu0 %2552 }
 0x1a3   : > { %v2545_v22 = vunpack.i.h.bf16 %v2543_v40  ;;  %v2544_v23 = vunpack.i.l.bf16 %v2543_v40  ;;  %v2554_v14 = vunpack.i.l.bf16 %v3650_v11  ;;  %v635_v40 = vsel %vm583_vm6, %v3975_v21, %v2440_v39 }
 0x1a4   : > { %2158 = vmatpush1.bf16.msra.mxu0 %v2157_v7  ;;  %v2555_v47 = vunpack.i.h.bf16 %v3650_v11 }
 0x1a5   : > { %v3655_v17 = vsel %vm981_vm5, %v2545_v22, %v2520_v5  ;;  %2160 = vmatprep.subr.bf16.mxu0 %v2159_v19  ;;  %v3659_v54 = vsel %vm981_vm5, %v2520_v5, %v2544_v23  ;;  %v570_v6 = vsel %vm569_vm8, %v2554_v14, %v2429_v10  ;;  %v2163_v23 = vpack.c.bf16 %v635_v40, %v2916_v4 }
 0x1a6   : > { %4009 = vst [vmem:[#allocation13_spill] sm:$0xff] %v3655_v17  ;;  %4010 = vst [vmem:[#allocation14_spill] sm:$0xff] %v3659_v54  ;;  %v3661_v29 = vpop.permute.xlu1 %2557  ;;  %v3663_v35 = vpop.permute.xlu0 %2562  ;;  %v4011_v22 = vunpack.i.l.bf16 %v3484_v62  ;;  %v4017_v17 = vunpack.i.l.bf16 %v3580_v0  ;;  %v2465_v0 = vunpack.i.h.bf16 %v3482_v37  ;;  %vm4024_vm5 = vcmask 916480  }
 0x1a7   : > { %v2559_v43 = vunpack.i.l.bf16 %v3661_v29  ;;  %vm4031_vm0 = vmmov %vm4024_vm5 }
 0x1a9   : > { %v601_v44 = vsel %vm600_vm7, %v2559_v43, %v2434_v13 }
 0x1aa   : > { %v2161_v52 = vpack.c.bf16 %v601_v44, %v570_v6  ;;  %v3671_v32 = vpop.permute.xlu1 %2567  ;;  %v3673_v19 = vpop.permute.xlu0 %2572 }
 0x1ac   : > { %2162 = vmatpush1.bf16.msra.mxu0 %v2161_v52 }
 0x1ad   : > { %2164 = vmatprep.subr.bf16.mxu0 %v2163_v23  ;;  %v4013_v23 = vunpack.i.l.bf16 %v3549_v63 }
 0x1ae   : > { %v3676_v36 = vpop.permute.xlu1 %2577  ;;  %v3678_v7 = vpop.permute.xlu0 %2582 }
 0x1af   : > { %v2584_v5 = vunpack.i.l.bf16 %v3678_v7 }
 0x1b1   : > { %v3684_v10 = vsel %vm791_vm15, %v2584_v5, %v4011_v22  ;;  %v2500_v22 = vunpack.i.h.bf16 %v3602_v12 }
 0x1b2   : > { %v3688_v39 = vpop.permute.xlu1 %2597  ;;  %v3690_v14 = vpop.permute.xlu0 %2587 }
 0x1b3   : > { %v1448_v12 = vsel %vm394_vm9, %v2500_v22, %v2524_v38 }
 0x1b6   : > { %v3692_v43 = vpop.permute.xlu1 %2602  ;;  %v3694_v40 = vpop.permute.xlu0 %2592 }
 0x1ba   : > { %v3696_v6 = vpop.permute.xlu1 %2617  ;;  %v3698_v44 = vpop.permute.xlu0 %2607 }
 0x1bb   : > { %4012 = vst [vmem:[#allocation15_spill] sm:$0xff] %v3696_v6  ;;  %v2609_v62 = vunpack.i.l.bf16 %v3698_v44  ;;  %v2619_v52 = vunpack.i.l.bf16 %v3696_v6 }
 0x1bd   : > { %v3705_v5 = vsel %vm283_vm3, %v2609_v62, %v4013_v23  ;;  %v3719_v63 = vsel %vm1043_vm14, %v2619_v52, %v4017_v17  ;;  %v4019_v62 = vunpack.i.l.bf16 %v3582_v31  ;;  %v1447_v17 = vsel %vm394_vm9, %v2525_v48, %v2500_v22 }
 0x1be   : > { %4014 = vst [vmem:[#allocation16_spill] sm:$0xff] %v3705_v5  ;;  %v3709_v13 = vpop.permute.xlu1 %2642  ;;  %v3711_v21 = vpop.permute.xlu0 %2612  ;;  %4018 = vst [vmem:[#allocation19_spill] sm:$0xff] %v3719_v63  ;;  %v2464_v5 = vunpack.i.l.bf16 %v3482_v37  ;;  %vm4022_vm9 = vcmask 15360  }
 0x1bf   : > { %4015 = vst [vmem:[#allocation17_spill] sm:$0xff] %v3709_v13  ;;  %4016 = vst [vmem:[#allocation18_spill] sm:$0xff] %v3711_v21  ;;  %v2614_v9 = vunpack.i.l.bf16 %v3711_v21  ;;  %v2550_v21 = vunpack.i.h.bf16 %v3636_v58 }
 0x1c1   : > { %v3724_v23 = vsel %vm1012_vm1, %v2614_v9, %v4019_v62 }
 0x1c2   : > { %4020 = vst [vmem:[#allocation20_spill] sm:$0xff] %v3724_v23  ;;  %v2648_v26 = vpop.permute.xlu1 %2647  ;;  %v2623_v54 = vpop.permute.xlu0 %2622  ;;  %v2560_v23 = vunpack.i.h.bf16 %v3661_v29 }
 0x1c3   : > { %v2625_v2 = vunpack.i.h.bf16 %v2623_v54  ;;  %v2624_v57 = vunpack.i.l.bf16 %v2623_v54  ;;  %v2650_v52 = vunpack.i.h.bf16 %v2648_v26  ;;  %v2649_v31 = vunpack.i.l.bf16 %v2648_v26 }
 0x1c4   : > { %v2529_v26 = vunpack.i.l.bf16 %v3616_v41 }
 0x1c5   : > { %v1429_v9 = vsel %vm520_vm10, %v2625_v2, %v2550_v21  ;;  %v1430_v62 = vsel %vm520_vm10, %v2550_v21, %v2624_v57  ;;  %v2565_v2 = vunpack.i.h.bf16 %v3663_v35  ;;  %v1489_v57 = vsel %vm600_vm7, %v2650_v52, %v2560_v23 }
 0x1c6   : > { %v2213_v63 = vpack.c.bf16 %v1447_v17, %v1429_v9  ;;  %v2653_v58 = vpop.permute.xlu1 %2652  ;;  %v2628_v59 = vpop.permute.xlu0 %2627  ;;  %v2211_v54 = vpack.c.bf16 %v1448_v12, %v1430_v62  ;;  %v4021_v21 = vunpack.i.l.bf16 %v3431_v1  ;;  %v1490_v17 = vsel %vm600_vm7, %v2560_v23, %v2649_v31 }
 0x1c7   : > { %v2654_v13 = vunpack.i.l.bf16 %v2653_v58  ;;  %v2630_v48 = vunpack.i.h.bf16 %v2628_v59  ;;  %v2629_v6 = vunpack.i.l.bf16 %v2628_v59  ;;  %v2655_v38 = vunpack.i.h.bf16 %v2653_v58 }
 0x1c8   : > { %2212 = vmatprep.subr.bf16.mxu1 %v2211_v54  ;;  %v2564_v59 = vunpack.i.l.bf16 %v3663_v35  ;;  %v2530_v1 = vunpack.i.h.bf16 %v3616_v41  ;;  %v2569_v35 = vunpack.i.l.bf16 %v3671_v32  ;;  %v4023_v31 = vunpack.i.l.bf16 %v3355_v55 }
 0x1c9   : > { %v634_v29 = vsel %vm583_vm6, %v2654_v13, %v4021_v21  ;;  %v1468_v22 = vsel %vm569_vm8, %v2630_v48, %v2555_v47  ;;  %2214 = vmatpush1.bf16.msra.mxu1 %v2213_v63  ;;  %v1469_v11 = vsel %vm569_vm8, %v2555_v47, %v2629_v6  ;;  %v3755_v63 = vsel %vm4022_vm9, %v2464_v5, %v2465_v0  ;;  %vm4029_vm8 = vmmov %vm4024_vm5 }
 0x1ca   : > { %v2165_v9 = vpack.c.bf16 %v634_v29, %v2908_v61  ;;  %v2217_v62 = vpack.c.bf16 %v1489_v57, %v1468_v22  ;;  %v2658_v12 = vpop.permute.xlu1 %2657  ;;  %v3749_v52 = vpop.permute.xlu0 %2632  ;;  %v2215_v58 = vpack.c.bf16 %v1490_v17, %v1469_v11  ;;  %v2504_v47 = vunpack.i.l.bf16 %v3604_v20 }
 0x1cb   : > { %v2660_v54 = vunpack.i.h.bf16 %v2658_v12  ;;  %v2659_v13 = vunpack.i.l.bf16 %v2658_v12  ;;  %v1514_v6 = vsel %vm583_vm6, %v2565_v2, %v2655_v38  ;;  %v1515_v23 = vsel %vm583_vm6, %v2655_v38, %v2564_v59  ;;  %v2742_v2 = vld [vmem:[#allocation2 + $0x10] sm:$0xff] }
 0x1cc   : > { %2166 = vmatpush1.bf16.msra.mxu0 %v2165_v9  ;;  %2216 = vmatprep.subr.bf16.mxu1 %v2215_v58  ;;  %v682_v41 = vsel %vm4024_vm5, %v2529_v26, %v4023_v31  ;;  %v2574_v48 = vunpack.i.l.bf16 %v3673_v19  ;;  %v4025_v57 = vunpack.i.l.bf16 %v3429_v60  ;;  %vm4026_vm7 = vcmask 924672   ;;  %v2743_v60 = vld [vmem:[#allocation2 + $0x8] sm:$0xff] }
 0x1cd   : > { %v4027_v21 = vpack.c.bf16 %v3451_v18, %v3446_v46  ;;  %2218 = vmatpush1.bf16.msra.mxu1 %v2217_v62  ;;  %v2219_v29 = vpack.c.bf16 %v1515_v23, %v2742_v2  ;;  %v2570_v22 = vunpack.i.h.bf16 %v3671_v32  ;;  %vm4028_vm6 = vmmov %vm4026_vm7  ;;  %v2505_v17 = vunpack.i.h.bf16 %v3604_v20 }
 0x1ce   : > { %v663_v0 = vsel %vm4026_vm7, %v2659_v13, %v4025_v57  ;;  %v2663_v11 = vpop.permute.xlu1 %2662  ;;  %v3772_v55 = vpop.permute.xlu0 %2637  ;;  %v1536_v26 = vsel %vm4028_vm6, %v2660_v54, %v2569_v35  ;;  %v2221_v59 = vpack.c.bf16 %v1514_v6, %v2743_v60  ;;  %v1554_v46 = vsel %vm4029_vm8, %v2530_v1, %v2504_v47  ;;  %vm4030_vm10 = vmmov %vm4028_vm6 }
 0x1cf   : > { %2168 = vmatprep.subr.bf16.mxu0 %v4027_v21  ;;  %v2169_v38 = vpack.c.bf16 %v682_v41, %v663_v0  ;;  %v2664_v9 = vunpack.i.l.bf16 %v2663_v11  ;;  %2220 = vmatprep.subr.bf16.mxu1 %v2219_v29  ;;  %v1535_v18 = vsel %vm4030_vm10, %v2570_v22, %v2660_v54  ;;  %v2665_v62 = vunpack.i.h.bf16 %v2663_v11  ;;  %vm4038_vm7 = vmmov %vm4033_vm2 }
 0x1d0   : > { %v2223_v12 = vpack.c.bf16 %v1554_v46, %v1536_v26  ;;  %v2179_v32 = vpack.c.bf16 %v2916_v4, %v3755_v63  ;;  %v1553_v58 = vsel %vm4031_vm0, %v2505_v17, %v2530_v1  ;;  %v4032_v13 = vunpack.i.l.bf16 %v3455_v27  ;;  %vm4041_vm8 = vmmov %vm4033_vm2 }
 0x1d1   : > { %2170 = vmatpush1.bf16.msra.mxu0 %v2169_v38  ;;  %v4034_v35 = vunpack.i.l.bf16 %v3453_v28  ;;  %vm4035_vm9 = vcmask 908288   ;;  %v4036_v47 = vpack.c.bf16 %v3477_v49, %v3472_v24  ;;  %2222 = vmatpush1.bf16.msra.mxu1 %v2221_v59  ;;  %v2575_v54 = vunpack.i.h.bf16 %v3673_v19 }
 0x1d2   : > { %v742_v20 = vsel %vm4033_vm2, %v2574_v48, %v4032_v13  ;;  %v2580_v23 = vunpack.i.h.bf16 %v3676_v36  ;;  %v2579_v63 = vunpack.i.l.bf16 %v3676_v36  ;;  %v2683_v31 = vpop.permute.xlu1 %2682  ;;  %v2668_v27 = vpop.permute.xlu0 %2667  ;;  %2224 = vmatprep.subr.bf16.mxu1 %v2223_v12  ;;  %v2589_v41 = vunpack.i.l.bf16 %v3690_v14  ;;  %vm4037_vm5 = vmmov %vm4035_vm9 }
 0x1d3   : > { %v711_v6 = vsel %vm4035_vm9, %v2664_v9, %v4034_v35  ;;  %2172 = vmatprep.subr.bf16.mxu0 %v4036_v47  ;;  %v2225_v28 = vpack.c.bf16 %v1553_v58, %v1535_v18  ;;  %v2670_v48 = vunpack.i.h.bf16 %v2668_v27  ;;  %v2669_v57 = vunpack.i.l.bf16 %v2668_v27  ;;  %vm4040_vm6 = vmmov %vm4037_vm5 }
 0x1d4   : > { %v2173_v1 = vpack.c.bf16 %v742_v20, %v711_v6  ;;  %v2510_v0 = vunpack.i.h.bf16 %v3608_v34  ;;  %v2535_v24 = vunpack.i.h.bf16 %v3634_v8  ;;  %v2534_v49 = vunpack.i.l.bf16 %v3634_v8  ;;  %v3826_v20 = vld [vmem:[#allocation2 + $0x8] sm:$0xff] }
 0x1d5   : > { %v1574_v19 = vsel %vm4037_vm5, %v2580_v23, %v2665_v62  ;;  %v2684_v21 = vunpack.i.l.bf16 %v2683_v31  ;;  %v1595_v36 = vsel %vm4038_vm7, %v2670_v48, %v2575_v54  ;;  %v4039_v2 = vpack.c.bf16 %v3514_v42, %v3509_v45  ;;  %2226 = vmatpush1.bf16.msra.mxu1 %v2225_v28 }
 0x1d6   : > { %2174 = vmatpush1.bf16.msra.mxu0 %v2173_v1  ;;  %v1575_v29 = vsel %vm4040_vm6, %v2665_v62, %v2579_v63  ;;  %v1596_v22 = vsel %vm4041_vm8, %v2575_v54, %v2669_v57  ;;  %v2585_v34 = vunpack.i.h.bf16 %v3678_v7  ;;  %v2590_v38 = vunpack.i.h.bf16 %v3690_v14  ;;  %v3806_v11 = vpop.permute.xlu1 %2697  ;;  %v2673_v26 = vpop.permute.xlu0 %2672 }
 0x1d7   : > { %2176 = vmatprep.subr.bf16.mxu0 %v4039_v2  ;;  %v2229_v8 = vpack.c.bf16 %v1595_v36, %v1574_v19  ;;  %v2227_v17 = vpack.c.bf16 %v1596_v22, %v1575_v29  ;;  %vm4042_vm10 = vcmask 15360   ;;  %v2685_v45 = vunpack.i.h.bf16 %v2683_v31 }
 0x1d8   : > { %v823_v60 = vsel %vm4042_vm10, %v2589_v41, %v2464_v5  ;;  %v2675_v42 = vunpack.i.h.bf16 %v2673_v26  ;;  %v2674_v59 = vunpack.i.l.bf16 %v2673_v26  ;;  %v1613_v9 = vsel %vm760_vm4, %v2535_v24, %v2510_v0  ;;  %vm4044_vm0 = vmmov %vm4042_vm10 }
 0x1d9   : > { %v4043_v46 = vpack.c.bf16 %v3684_v10, %v3614_v56  ;;  %2228 = vmatprep.subr.bf16.mxu1 %v2227_v17  ;;  %v1614_v7 = vsel %vm760_vm4, %v2510_v0, %v2534_v49  ;;  %v1656_v5 = vsel %vm4044_vm0, %v2590_v38, %v2684_v21  ;;  %v2181_v18 = vpack.c.bf16 %v2908_v61, %v823_v60  ;;  %vm4045_vm2 = vmmov %vm4044_vm0  ;;  %v3823_v10 = vld [vmem:[#allocation2 + $0x10] sm:$0xff] }
 0x1da   : > { %v1634_v14 = vsel %vm791_vm15, %v2675_v42, %v2585_v34  ;;  %2230 = vmatpush1.bf16.msra.mxu1 %v2229_v8  ;;  %v1635_v37 = vsel %vm791_vm15, %v2585_v34, %v2674_v59  ;;  %v2703_v12 = vpop.permute.xlu1 %2702  ;;  %v3820_v58 = vpop.permute.xlu0 %2677  ;;  %v1655_v56 = vsel %vm4045_vm2, %v2685_v45, %v2590_v38  ;;  %v4046_v6 = vpack.c.bf16 %v3544_v51, %v3539_v16 }
 0x1db   : > { %2178 = vmatpush1.bf16.msra.mxu0 %v4043_v46  ;;  %v2233_v62 = vpack.c.bf16 %v1634_v14, %v1613_v9  ;;  %v2231_v13 = vpack.c.bf16 %v1635_v37, %v1614_v7  ;;  %v2704_v35 = vunpack.i.l.bf16 %v2703_v12  ;;  %v2595_v47 = vunpack.i.h.bf16 %v3694_v40  ;;  %v4051_v14 = vld [vmem:[#allocation15_spill] sm:$0xff] }
 0x1dc   : > { %2180 = vmatprep.subr.bf16.mxu0 %v2179_v32  ;;  %v2235_v32 = vpack.c.bf16 %v3823_v10, %v1656_v5  ;;  %v2237_v54 = vpack.c.bf16 %v3826_v20, %v1655_v56  ;;  %v2705_v23 = vunpack.i.h.bf16 %v2703_v12  ;;  %v2600_v48 = vunpack.i.h.bf16 %v3688_v39  ;;  %v4054_v12 = vld [vmem:[#allocation8_spill] sm:$0xff]  ;;  %v4057_v56 = vld [vmem:[#allocation18_spill] sm:$0xff] }
 0x1dd   : > { %2232 = vmatprep.subr.bf16.mxu1 %v2231_v13  ;;  %v2599_v57 = vunpack.i.l.bf16 %v3688_v39  ;;  %v2604_v16 = vunpack.i.l.bf16 %v3692_v43  ;;  %v2594_v51 = vunpack.i.l.bf16 %v3694_v40  ;;  %v4047_v0 = vunpack.i.l.bf16 %v3518_v15  ;;  %v4055_v13 = vld [vmem:[#allocation7_spill] sm:$0xff] }
 0x1de   : > { %2234 = vmatpush1.bf16.msra.mxu1 %v2233_v62  ;;  %v2708_v63 = vpop.permute.xlu1 %2707  ;;  %v2688_v1 = vpop.permute.xlu0 %2687  ;;  %v4048_v49 = vunpack.i.l.bf16 %v3547_v30  ;;  %v4049_v21 = vunpack.i.l.bf16 %v3520_v50  ;;  %v1701_v39 = vsel %vm774_vm12, %v2600_v48, %v2705_v23  ;;  %v2605_v8 = vunpack.i.h.bf16 %v3692_v43 }
 0x1df   : > { %2182 = vmatpush1.bf16.msra.mxu0 %v2181_v18  ;;  %2236 = vmatprep.subr.bf16.mxu1 %v2235_v32  ;;  %v2710_v31 = vunpack.i.h.bf16 %v2708_v63  ;;  %v2709_v27 = vunpack.i.l.bf16 %v2708_v63  ;;  %v2690_v41 = vunpack.i.h.bf16 %v2688_v1  ;;  %v2689_v28 = vunpack.i.l.bf16 %v2688_v1  ;;  %v4060_v1 = vld [vmem:[#allocation13_spill] sm:$0xff] }
 0x1e0   : > { %2184 = vmatprep.subr.bf16.mxu0 %v4046_v6  ;;  %v885_v24 = vsel %vm774_vm12, %v2704_v35, %v4047_v0  ;;  %v1702_v38 = vsel %vm774_vm12, %v2705_v23, %v2599_v57  ;;  %v4050_v17 = vpack.c.bf16 %v3570_v33, %v3565_v3  ;;  %v2634_v60 = vunpack.i.l.bf16 %v3749_v52  ;;  %v4052_v3 = vld [vmem:[#allocation17_spill] sm:$0xff]  ;;  %v4061_v0 = vld [vmem:[#allocation11_spill] sm:$0xff] }
 0x1e1   : > { %v933_v19 = vsel %vm724_vm11, %v2709_v27, %v4048_v49  ;;  %v856_v36 = vsel %vm805_vm13, %v2689_v28, %v4049_v21  ;;  %v1680_v2 = vsel %vm805_vm13, %v2595_v47, %v2690_v41  ;;  %v1681_v30 = vsel %vm805_vm13, %v2690_v41, %v2594_v51 }
 0x1e2   : > { %2238 = vmatpush1.bf16.msra.mxu1 %v2237_v54  ;;  %v2189_v29 = vpack.c.bf16 %v933_v19, %v3629_v25  ;;  %v2185_v40 = vpack.c.bf16 %v885_v24, %v856_v36  ;;  %v3849_v22 = vpop.permute.xlu1 %1150  ;;  %v3851_v15 = vpop.permute.xlu0 %2692  ;;  %v2241_v34 = vpack.c.bf16 %v1701_v39, %v1680_v2  ;;  %v1741_v50 = vsel %vm724_vm11, %v2710_v31, %v2604_v16  ;;  %v4058_v54 = vld [vmem:[#allocation14_spill] sm:$0xff]  ;;  %v4062_v24 = vld [vmem:[#allocation16_spill] sm:$0xff]  ;;  %v4065_v2 = vld [vmem:[#allocation9_spill] sm:$0xff] }
 0x1e3   : > { %v2239_v26 = vpack.c.bf16 %v1702_v38, %v1681_v30  ;;  %v2635_v25 = vunpack.i.h.bf16 %v3749_v52  ;;  %v1740_v45 = vsel %vm724_vm11, %v2605_v8, %v2710_v31  ;;  %v2243_v9 = vpack.c.bf16 %v1741_v50, %v3639_v53  ;;  %v4053_v52 = vld [vmem:[#allocation12_spill] sm:$0xff]  ;;  %v4064_v36 = vld [vmem:[#allocation10_spill] sm:$0xff] }
 0x1e4   : > { %2186 = vmatpush1.bf16.msra.mxu0 %v2185_v40  ;;  %v2610_v46 = vunpack.i.h.bf16 %v3698_v44  ;;  %v2620_v37 = vunpack.i.h.bf16 %v4051_v14  ;;  %v2645_v33 = vunpack.i.h.bf16 %v4052_v3  ;;  %vm1124_vm4 = vcmask 654336  }
 0x1e5   : > { %2188 = vmatprep.subr.bf16.mxu0 %v4050_v17  ;;  %2240 = vmatprep.subr.bf16.mxu1 %v2239_v26  ;;  %v2245_v5 = vpack.c.bf16 %v1740_v45, %v4053_v52  ;;  %v4056_v53 = vpack.c.bf16 %v4054_v12, %v4055_v13  ;;  %v2615_v32 = vunpack.i.h.bf16 %v4057_v56  ;;  %vm4059_vm11 = vcmask 1022976   ;;  %v4076_v56 = vld [vmem:[#allocation4_spill] sm:$0xff] }
 0x1e6   : > { %v2728_v42 = vpop.permute.xlu1 %2727  ;;  %v2713_v59 = vpop.permute.xlu0 %2712  ;;  %2242 = vmatpush1.bf16.msra.mxu1 %v2241_v34  ;;  %v1078_v63 = vsel %vm4059_vm11, %v2634_v60, %v2635_v25  ;;  %v2644_v48 = vunpack.i.l.bf16 %v4052_v3  ;;  %v2680_v57 = vunpack.i.h.bf16 %v3820_v58  ;;  %v2679_v16 = vunpack.i.l.bf16 %v3820_v58 }
 0x1e7   : > { %v2715_v43 = vunpack.i.h.bf16 %v2713_v59  ;;  %v2714_v7 = vunpack.i.l.bf16 %v2713_v59  ;;  %2244 = vmatprep.subr.bf16.mxu1 %v2243_v9  ;;  %v2729_v18 = vunpack.i.l.bf16 %v2728_v42  ;;  %v2730_v35 = vunpack.i.h.bf16 %v2728_v42  ;;  %v4068_v59 = vld [vmem:[#allocation19_spill] sm:$0xff]  ;;  %v4069_v9 = vld [vmem:[#allocation20_spill] sm:$0xff] }
 0x1e8   : > { %2190 = vmatpush1.bf16.msra.mxu0 %v2189_v29  ;;  %v4063_v49 = vpack.c.bf16 %v4061_v0, %v4062_v24  ;;  %v2639_v19 = vunpack.i.l.bf16 %v3772_v55  ;;  %v4066_v39 = vpack.c.bf16 %v4064_v36, %v4065_v2  ;;  %v2199_v8 = vpack.c.bf16 %v1078_v63, %v2916_v4 }
 0x1e9   : > { %v1761_v62 = vsel %vm283_vm3, %v2715_v43, %v2610_v46  ;;  %2192 = vmatprep.subr.bf16.mxu0 %v4056_v53  ;;  %v1762_v44 = vsel %vm283_vm3, %v2610_v46, %v2714_v7  ;;  %v1822_v40 = vsel %vm1043_vm14, %v2620_v37, %v2729_v18  ;;  %v1821_v58 = vsel %vm1043_vm14, %v2730_v35, %v2620_v37  ;;  %vm4067_vm3 = vmmov %vm4059_vm11 }
 0x1ea   : > { %v2733_v6 = vpop.permute.xlu1 %2732  ;;  %v2718_v47 = vpop.permute.xlu0 %2717  ;;  %v2247_v23 = vpack.c.bf16 %v4058_v54, %v1762_v44  ;;  %v2249_v31 = vpack.c.bf16 %v4060_v1, %v1761_v62  ;;  %2246 = vmatpush1.bf16.msra.mxu1 %v2245_v5  ;;  %v2640_v42 = vunpack.i.h.bf16 %v3772_v55  ;;  %v4070_v46 = vpack.c.bf16 %v4068_v59, %v4069_v9  ;;  %vm4071_vm12 = vmmov %vm4067_vm3  ;;  %v4080_v1 = vld [vmem:[#allocation6_spill] sm:$0xff] }
 0x1eb   : > { %v2734_v27 = vunpack.i.l.bf16 %v2733_v6  ;;  %v2720_v41 = vunpack.i.h.bf16 %v2718_v47  ;;  %v2719_v28 = vunpack.i.l.bf16 %v2718_v47  ;;  %v2735_v51 = vunpack.i.h.bf16 %v2733_v6  ;;  %vm4073_vm14 = vmmov %vm4067_vm3 }
 0x1ec   : > { %2194 = vmatpush1.bf16.msra.mxu0 %v4063_v49  ;;  %2248 = vmatprep.subr.bf16.mxu1 %v2247_v23  ;;  %v2699_v7 = vunpack.i.l.bf16 %v3806_v11  ;;  %v2695_v4 = vunpack.i.h.bf16 %v3851_v15  ;;  %v2694_v14 = vunpack.i.l.bf16 %v3851_v15  ;;  %vm4072_vm13 = vcmask 678912  }
 0x1ed   : > { %v1800_v21 = vsel %vm1012_vm1, %v2720_v41, %v2615_v32  ;;  %2196 = vmatprep.subr.bf16.mxu0 %v4066_v39  ;;  %v1801_v29 = vsel %vm1012_vm1, %v2615_v32, %v2719_v28  ;;  %v1077_v34 = vsel %vm4067_vm3, %v2734_v27, %v2634_v60  ;;  %v1847_v43 = vsel %vm4071_vm12, %v2735_v51, %v2639_v19  ;;  %vm4074_vm15 = vmmov %vm4072_vm13  ;;  %v4077_v32 = vld [vmem:[#allocation5_spill] sm:$0xff] }
 0x1ee   : > { %v2738_v30 = vpop.permute.xlu1 %2737  ;;  %v2723_v38 = vpop.permute.xlu0 %2722  ;;  %v2251_v50 = vpack.c.bf16 %v1822_v40, %v1801_v29  ;;  %v2253_v26 = vpack.c.bf16 %v1821_v58, %v1800_v21  ;;  %2250 = vmatpush1.bf16.msra.mxu1 %v2249_v31  ;;  %v1126_v60 = vsel %vm1124_vm4, %v2679_v16, %v2680_v57  ;;  %v1107_v37 = vsel %vm4072_vm13, %v2644_v48, %v2645_v33  ;;  %vm4075_vm1 = vmmov %vm4072_vm13 }
 0x1ef   : > { %v2740_v17 = vunpack.i.h.bf16 %v2738_v30  ;;  %v2739_v25 = vunpack.i.l.bf16 %v2738_v30  ;;  %v2724_v45 = vunpack.i.l.bf16 %v2723_v38  ;;  %v2201_v55 = vpack.c.bf16 %v1077_v34, %v2908_v61  ;;  %vm4078_vm9 = vmmov %vm4075_vm1 }
 0x1f0   : > { %2198 = vmatpush1.bf16.msra.mxu0 %v4070_v46  ;;  %2252 = vmatprep.subr.bf16.mxu1 %v2251_v50  ;;  %v1846_v3 = vsel %vm4073_vm14, %v2640_v42, %v2735_v51  ;;  %v2725_v52 = vunpack.i.h.bf16 %v2723_v38  ;;  %v2255_v62 = vpack.c.bf16 %v1847_v43, %v3823_v10  ;;  %v2203_v13 = vpack.c.bf16 %v1126_v60, %v1107_v37 }
 0x1f1   : > { %2200 = vmatprep.subr.bf16.mxu0 %v2199_v8  ;;  %v1106_v12 = vsel %vm4074_vm15, %v2739_v25, %v2644_v48  ;;  %v1868_v53 = vsel %vm4075_vm1, %v2740_v17, %v2699_v7  ;;  %v1886_v15 = vsel %vm1124_vm4, %v2695_v4, %v2724_v45  ;;  %v2700_v44 = vunpack.i.h.bf16 %v3806_v11  ;;  %v480_v11 = vld [vmem:[%s3938_s4] sm:$0xff] }
 0x1f2   : > { %v1149_v5 = vpop.permute.xlu1 %1148  ;;  %v1153_v18 = vpop.permute.xlu0 %1152  ;;  %2254 = vmatpush1.bf16.msra.mxu1 %v2253_v26  ;;  %v1125_v61 = vsel %vm1124_vm4, %v2694_v14, %v2679_v16  ;;  %v2257_v33 = vpack.c.bf16 %v1846_v3, %v3826_v20  ;;  %v487_v10 = vrot.slane %v4077_v32, %v4076_v56  ;;  %v1885_v47 = vsel %vm1124_vm4, %v2725_v52, %v2695_v4 }
 0x1f3   : > { %2256 = vmatprep.subr.bf16.mxu1 %v2255_v62  ;;  %v2205_v35 = vpack.c.bf16 %v1125_v61, %v1106_v12  ;;  %v1867_v6 = vsel %vm4078_vm9, %v2700_v44, %v2740_v17  ;;  %v2259_v23 = vpack.c.bf16 %v1886_v15, %v1868_v53  ;;  %vm4079_vm5 = vcmask 629760  }
 0x1f4   : > { %2202 = vmatpush1.bf16.msra.mxu0 %v2201_v55  ;;  %v1155_v20 = vsel %vm4079_vm5, %v3849_v22, %v1153_v18  ;;  %v1405_v31 = vrot.slane %v4080_v1, %v4076_v56  ;;  %v2261_v27 = vpack.c.bf16 %v1885_v47, %v1867_v6  ;;  %v494_v41 = vmul.f32 %v487_v10, %v480_v11  ;;  %vm4081_vm7 = vmmov %vm4079_vm5 }
 0x1f5   : > { %2204 = vmatprep.subr.bf16.mxu0 %v2203_v13  ;;  %v1154_v48 = vsel %vm4081_vm7, %v1149_v5, %v3849_v22  ;;  %vm4082_vm6 = vmmov %vm4079_vm5 }
 0x1f6   : > { %v1903_v54 = vpop.permute.xlu0 %1902  ;;  %2258 = vmatpush1.bf16.msra.mxu1 %v2257_v33  ;;  %v1905_v63 = vpop.permute.xlu1 %1904  ;;  %vm4083_vm8 = vmmov %vm4079_vm5  ;;  %v1412_v51 = vmul.f32 %v1405_v31, %v480_v11 }
 0x1f7   : > { %2260 = vmatprep.subr.bf16.mxu1 %v2259_v23  ;;  %v1907_v57 = vsel %vm4082_vm6, %v1903_v54, %v1905_v63 }
 0x1f8   : > { %2206 = vmatpush1.bf16.msra.mxu0 %v2205_v35 }
 0x1f9   : > { %1270 = vmatprep.subr.mxu0 %v1155_v20 }
 0x1fa   : > { %v1901_v28 = vpop.permute.xlu0 %1900  ;;  %2262 = vmatpush1.bf16.msra.mxu1 %v2261_v27 }
 0x1fb   : > { %v1906_v16 = vsel %vm4083_vm8, %v1901_v28, %v1903_v54  ;;  %2021 = vmatprep.subr.mxu1 %v1907_v57 }
 0x1fc   : > { %1271 = vmatpush1.msra.mxu0 %v1154_v48 }
 0x1fd   : > { %1283 = vmatmul.mubr.f32.vlgmr.msra.gmra.mrb[2].mxu0 %v494_v41 }
 0x1fe   : > { %2022 = vmatpush1.msra.mxu1 %v1906_v16 }
 0x1ff   : > { %2034 = vmatmul.mubr.f32.vlgmr.msra.gmra.mrb[2].mxu1 %v1412_v51 }
 0x207   : > { %v392_v0 = vpop.permute.xlu1 %391 }
 0x20b   : > { %v1310_v21 = vpop.permute.xlu0 %1309 }
 0x2d0   : > { %v1284_v24 = vpop.f32.mrb[2].mxu0 }
 0x2d1   : > { %v2263_v49 = vadd.f32 %v1284_v24, %v392_v0  ;;  %v1286_v22 = vpop.f32.mrb[3].mxu0 }
 0x2d2   : > { %v2264_v19 = vadd.f32 %v1286_v22, %v392_v0  ;;  %v2035_v36 = vpop.f32.mrb[2].mxu1 }
 0x2d3   : > { %1291 = vst [vmem:[%s280_s29] sm:$0xff] %v2263_v49  ;;  %v2265_v2 = vadd.f32 %v2035_v36, %v1310_v21  ;;  %v2037_v39 = vpop.f32.mrb[3].mxu1 }
 0x2d4   : > { %1292 = vst [vmem:[%s280_s29 + $0x8] sm:$0xff] %v2264_v19  ;;  %v2266_v29 = vadd.f32 %v2037_v39, %v1310_v21 }
 0x2d5   : > { %2145 = vst [vmem:[%s280_s29 + $0x10] sm:$0xff] %v2265_v2 }
 0x2d6   : > { %2146 = vst [vmem:[%s280_s29 + $0x18] sm:$0xff] %v2266_v29 }
 0x2d7 PF: > { %s16_s21 = sadd.s32 1, %s2750_s21  }
 0x2d8   : > { %p13_p4 = scmp.ge.s32.totalorder %s16_s21, 4  }
 0x2da   :  { %15 = sbr.rel (!%p13_p4) target bundleno = 1 (0x1), region = 80 }

</bundles_post_ra>
